<compile_context>
chip_gen: v6e
topology: v6e:2x2x1
jax: 0.10.0
libtpu: 0.0.40
codegen_flags: <defaults>
</compile_context>

<pallas_src>
import functools
import math

import jax
import jax.numpy as jnp
from jax import lax
from jax.experimental import pallas as pl
from jax.experimental.pallas import tpu as pltpu


# ---------------------------------------------------------------------------
# helpers
# ---------------------------------------------------------------------------
def _round_up(x, m):
    return ((x + m - 1) // m) * m


def _pad_dim(a, target, axis):
    pad = target - a.shape[axis]
    if pad == 0:
        return a
    cfg = [(0, 0)] * a.ndim
    cfg[axis] = (0, pad)
    return jnp.pad(a, cfg)


_NEG_BIG = float(-jnp.finfo(jnp.float32).max)   # matches torch masked_fill_(-finfo.max)


# ---------------------------------------------------------------------------
# Linear projection kernel (x @ W + b), row-tiled, bf16 MXU operands, f32 accumulate
# ---------------------------------------------------------------------------
def _linear_kernel(x_ref, w_ref, b_ref, o_ref):
    x = x_ref[...].astype(jnp.bfloat16)        # bf16 MXU operand
    w = w_ref[...]                             # already bf16 (cast once in wrapper)
    acc = jnp.dot(x, w, preferred_element_type=jnp.float32)
    o_ref[...] = (acc + b_ref[...]).astype(o_ref.dtype)


def linear_pallas(x2d, w, b=None, *, block_m=256, out_dtype=None):
    """x2d: (M, D) @ w: (D, O) + b: (O,) -> (M, O) in out_dtype (default x2d.dtype)."""
    M, D = x2d.shape
    _, O = w.shape
    out_dtype = out_dtype or x2d.dtype
    if b is None:
        b = jnp.zeros((O,), jnp.float32)

    # lane-dense feature dims (multiples of 128); large row tile, padded rows
    Dp = _round_up(D, 128)
    Op = _round_up(O, 128)
    tm = min(block_m, _round_up(M, 8))
    Mp = _round_up(M, tm)

    xp = _pad_dim(_pad_dim(x2d, Mp, 0), Dp, 1)
    wp = _pad_dim(_pad_dim(w, Dp, 0), Op, 1).astype(jnp.bfloat16)   # one-time weight cast
    bp = _pad_dim(b.reshape(1, O).astype(jnp.float32), Op, 1)

    cost = pl.CostEstimate(
        flops=2 * Mp * Dp * Op,
        transcendentals=0,
        bytes_accessed=(xp.size * xp.dtype.itemsize + wp.size * 2 + bp.size * 4
                        + Mp * Op * jnp.dtype(out_dtype).itemsize),
    )

    out = pl.pallas_call(
        _linear_kernel,
        out_shape=jax.ShapeDtypeStruct((Mp, Op), out_dtype),
        grid_spec=pltpu.PrefetchScalarGridSpec(
            num_scalar_prefetch=0,
            grid=(Mp // tm,),
            in_specs=[
                pl.BlockSpec((tm, Dp), lambda i: (i, 0)),   # x row tile
                pl.BlockSpec((Dp, Op), lambda i: (0, 0)),   # W (constant index -> resident)
                pl.BlockSpec((1, Op), lambda i: (0, 0)),    # bias
            ],
            out_specs=pl.BlockSpec((tm, Op), lambda i: (i, 0)),
        ),
        compiler_params=pltpu.CompilerParams(
            dimension_semantics=("parallel",),
            vmem_limit_bytes=48 * 1024 * 1024,
        ),
        cost_estimate=cost,
    )(xp, wp, bp)

    return out[:M, :O]


# ---------------------------------------------------------------------------
# Attention kernels: q (1,tq,E) and fused kv (1,tk,2E) blocks, heads split in-kernel
# ---------------------------------------------------------------------------
def _attn_single_kv_kernel(q_ref, kv_ref, o_ref, *, heads, dim_head, scale,
                           kv_len, needs_mask):
    """Fast path: one kv tile covers the whole context -> plain in-register softmax."""
    E = heads * dim_head
    q = q_ref[0] * scale                       # (tq, E) bf16; scale folded into q
    kv = kv_ref[0]                             # (tk, 2E) bf16
    tq, tk = q.shape[0], kv.shape[0]

    col_valid = None
    if needs_mask:                             # static: only when Nk is not a tile multiple
        col = lax.broadcasted_iota(jnp.int32, (tq, tk), 1)
        col_valid = col < kv_len

    outs = []
    for h in range(heads):                     # static unroll over heads
        qh = q[:, h * dim_head:(h + 1) * dim_head]
        kh = kv[:, h * dim_head:(h + 1) * dim_head]
        vh = kv[:, E + h * dim_head:E + (h + 1) * dim_head]
        s = lax.dot_general(qh, kh, (((1,), (1,)), ((), ())),
                            preferred_element_type=jnp.float32)       # (tq, tk) f32
        if needs_mask:
            s = jnp.where(col_valid, s, _NEG_BIG)
        m = jnp.max(s, axis=-1, keepdims=True)
        p = jnp.exp(s - m)
        l = jnp.sum(p, axis=-1, keepdims=True)
        oh = jnp.dot(p.astype(vh.dtype), vh, preferred_element_type=jnp.float32)
        outs.append(oh * pl.reciprocal(l, approx=True))
    o_ref[0] = jnp.concatenate(outs, axis=-1).astype(o_ref.dtype)


def _attn_flash_kernel(q_ref, kv_ref, o_ref, m_sc, l_sc, acc_sc, *, heads, dim_head,
                       scale, kv_len, block_k, needs_mask):
    """General path: online softmax over kv tiles (reduction axis last in the grid)."""
    E = heads * dim_head
    ki = pl.program_id(2)

    @pl.when(ki == 0)
    def _():
        m_sc[...] = jnp.full_like(m_sc, -jnp.inf)
        l_sc[...] = jnp.zeros_like(l_sc)
        acc_sc[...] = jnp.zeros_like(acc_sc)

    q = q_ref[0] * scale                       # (tq, E) bf16
    kv = kv_ref[0]                             # (tk, 2E) bf16
    tq, tk = q.shape[0], kv.shape[0]

    col_valid = None
    if needs_mask:
        col = ki * block_k + lax.broadcasted_iota(jnp.int32, (tq, tk), 1)
        col_valid = col < kv_len

    for h in range(heads):
        qh = q[:, h * dim_head:(h + 1) * dim_head]
        kh = kv[:, h * dim_head:(h + 1) * dim_head]
        vh = kv[:, E + h * dim_head:E + (h + 1) * dim_head]
        s = lax.dot_general(qh, kh, (((1,), (1,)), ((), ())),
                            preferred_element_type=jnp.float32)       # (tq, tk) f32
        if needs_mask:
            s = jnp.where(col_valid, s, _NEG_BIG)

        m_prev = m_sc[h]                                               # (tq, 128), lanes equal
        l_prev = l_sc[h]
        m_new = jnp.maximum(m_prev, jnp.max(s, axis=-1, keepdims=True))
        alpha = jnp.exp(m_prev - m_new)                                # (tq, 128)
        p = jnp.exp(s - m_new[:, :1])                                  # (tq, tk) f32
        l_sc[h] = alpha * l_prev + jnp.sum(p, axis=-1, keepdims=True)
        acc_sc[h] = alpha[:, :1] * acc_sc[h] + jnp.dot(
            p.astype(vh.dtype), vh, preferred_element_type=jnp.float32)
        m_sc[h] = m_new

    @pl.when(ki == pl.num_programs(2) - 1)
    def _():
        outs = []
        for h in range(heads):
            inv = pl.reciprocal(l_sc[h][:, :1], approx=True)
            outs.append(acc_sc[h] * inv)
        o_ref[0] = jnp.concatenate(outs, axis=-1).astype(o_ref.dtype)


def multi_head_attention(q, kv, *, heads, scale, block_q=256, block_k=256):
    """q: (B, Nq, E), kv: (B, Nk, 2E) -> (B, Nq, E). Head split/merge done in-kernel."""
    B, Nq, E = q.shape
    _, Nk, E2 = kv.shape
    assert E2 == 2 * E and E % heads == 0
    dim_head = E // heads

    tq = min(block_q, _round_up(Nq, 8))
    tk = min(block_k, _round_up(Nk, 8))
    Nqp = _round_up(Nq, tq)
    Nkp = _round_up(Nk, tk)

    qp = _pad_dim(q, Nqp, axis=1)
    kvp = _pad_dim(kv, Nkp, axis=1)
    num_q, num_k = Nqp // tq, Nkp // tk
    needs_mask = (Nkp != Nk)

    common = dict(heads=heads, dim_head=dim_head, scale=scale,
                  kv_len=Nk, needs_mask=needs_mask)
    itemsize = jnp.dtype(q.dtype).itemsize
    cost = pl.CostEstimate(
        flops=4 * B * Nqp * Nkp * E,
        transcendentals=B * heads * Nqp * Nkp,
        bytes_accessed=(qp.size + kvp.size * num_q + B * Nqp * E) * itemsize,
    )

    if num_k == 1:
        # SD cross-attention shape (Nk=77): no online softmax / scratch needed.
        kernel = functools.partial(_attn_single_kv_kernel, **common)
        grid = (B, num_q)
        in_specs = [
            pl.BlockSpec((1, tq, E), lambda b, qi: (b, qi, 0)),
            pl.BlockSpec((1, tk, E2), lambda b, qi: (b, 0, 0)),
        ]
        out_specs = pl.BlockSpec((1, tq, E), lambda b, qi: (b, qi, 0))
        scratch = []
        dims = ("parallel", "parallel")
    else:
        kernel = functools.partial(_attn_flash_kernel, block_k=tk, **common)
        grid = (B, num_q, num_k)
        in_specs = [
            pl.BlockSpec((1, tq, E), lambda b, qi, ki: (b, qi, 0)),
            pl.BlockSpec((1, tk, E2), lambda b, qi, ki: (b, ki, 0)),
        ]
        out_specs = pl.BlockSpec((1, tq, E), lambda b, qi, ki: (b, qi, 0))
        scratch = [
            pltpu.VMEM((heads, tq, 128), jnp.float32),       # running max (lane-dense)
            pltpu.VMEM((heads, tq, 128), jnp.float32),       # running denom (lane-dense)
            pltpu.VMEM((heads, tq, dim_head), jnp.float32),  # f32 accumulator
        ]
        dims = ("parallel", "parallel", "arbitrary")

    out = pl.pallas_call(
        kernel,
        out_shape=jax.ShapeDtypeStruct((B, Nqp, E), q.dtype),
        grid_spec=pltpu.PrefetchScalarGridSpec(
            num_scalar_prefetch=0,
            grid=grid,
            in_specs=in_specs,
            out_specs=out_specs,
            scratch_shapes=scratch,
        ),
        compiler_params=pltpu.CompilerParams(
            dimension_semantics=dims,
            vmem_limit_bytes=48 * 1024 * 1024,
        ),
        cost_estimate=cost,
    )(qp, kvp)

    return out[:, :Nq, :]


# ---------------------------------------------------------------------------
# CrossAttention forward
# ---------------------------------------------------------------------------
@functools.partial(jax.jit, static_argnames=("heads", "block_q", "block_k", "block_m"))
def cross_attention(x, context, wq, wk, wv, wo, bo, *, heads,
                    block_q=256, block_k=256, block_m=256):
    """x: (B, N, query_dim); context: (B, Nc, context_dim).  mask=None, dropout=0."""
    B, N, Dq = x.shape
    _, Nc, Dc = context.shape
    inner = wq.shape[1]
    dim_head = inner // heads
    scale = dim_head ** -0.5

    x2d = x.reshape(B * N, Dq)
    c2d = context.reshape(B * Nc, Dc)

    # projections (no bias); k & v fused so context is read once; bf16 intermediates.
    q = linear_pallas(x2d, wq, None, block_m=block_m, out_dtype=jnp.bfloat16)
    wkv = jnp.concatenate([wk, wv], axis=1)                     # (Dc, 2*inner)
    kv = linear_pallas(c2d, wkv, None, block_m=block_m, out_dtype=jnp.bfloat16)

    # 'b n (h d)' layout end-to-end -- no HBM transposes; heads handled in-kernel.
    q3 = q.reshape(B, N, inner)
    kv3 = kv.reshape(B, Nc, 2 * inner)
    o = multi_head_attention(q3, kv3, heads=heads, scale=scale,
                             block_q=block_q, block_k=block_k)   # (B, N, inner) bf16

    # to_out: Linear(inner, query_dim) + Dropout(0.0) = identity
    out = linear_pallas(o.reshape(B * N, inner), wo, bo, block_m=block_m,
                        out_dtype=x.dtype)
    return out.reshape(B, N, wo.shape[1])
    # TODO(synk): optional boolean `mask` argument (forward default mask=None),
    # knn_memory and return_attn are not implemented.


# ---------------------------------------------------------------------------
# Plain-JAX reference for verification
# ---------------------------------------------------------------------------
def cross_attention_ref(x, context, wq, wk, wv, wo, bo, heads):
    B, N, _ = x.shape
    _, Nc, _ = context.shape
    inner = wq.shape[1]
    d = inner // heads
    scale = d ** -0.5
    q = jnp.einsum('bnd,de->bne', x, wq)
    k = jnp.einsum('bnd,de->bne', context, wk)
    v = jnp.einsum('bnd,de->bne', context, wv)
    q = q.reshape(B, N, heads, d).transpose(0, 2, 1, 3)
    k = k.reshape(B, Nc, heads, d).transpose(0, 2, 1, 3)
    v = v.reshape(B, Nc, heads, d).transpose(0, 2, 1, 3)
    sim = jnp.einsum('bhid,bhjd->bhij', q, k) * scale
    attn = jax.nn.softmax(sim, axis=-1)
    o = jnp.einsum('bhij,bhjd->bhid', attn, v)
    o = o.transpose(0, 2, 1, 3).reshape(B, N, inner)
    return jnp.einsum('bne,eo->bno', o, wo) + bo


if __name__ == "__main__":
    key = jax.random.PRNGKey(0)

    def make_weights(k, query_dim, context_dim, heads, dim_head):
        inner = heads * dim_head
        k1, k2, k3, k4, k5 = jax.random.split(k, 5)
        bq = 1.0 / math.sqrt(query_dim)
        bc = 1.0 / math.sqrt(context_dim)
        bi = 1.0 / math.sqrt(inner)
        wq = jax.random.uniform(k1, (query_dim, inner), jnp.float32, -bq, bq)
        wk = jax.random.uniform(k2, (context_dim, inner), jnp.float32, -bc, bc)
        wv = jax.random.uniform(k3, (context_dim, inner), jnp.float32, -bc, bc)
        wo = jax.random.uniform(k4, (inner, query_dim), jnp.float32, -bi, bi)
        bo = jax.random.uniform(k5, (query_dim,), jnp.float32, -bi, bi)
        return wq, wk, wv, wo, bo

    # --- Test 1: cross-attention (CLIP-like context len 77) -> single-kv-tile path ---
    B, N, Nc = 2, 64, 77
    query_dim, context_dim, heads, dim_head = 64, 96, 2, 64
    kx, kc, kw, key = jax.random.split(key, 4)
    x = jax.random.normal(kx, (B, N, query_dim), jnp.float32)
    ctx = jax.random.normal(kc, (B, Nc, context_dim), jnp.float32)
    wq, wk, wv, wo, bo = make_weights(kw, query_dim, context_dim, heads, dim_head)

    out = cross_attention(x, ctx, wq, wk, wv, wo, bo, heads=heads)
    out = jax.block_until_ready(out)
    ref = cross_attention_ref(x, ctx, wq, wk, wv, wo, bo, heads)
    assert out.shape == ref.shape
    err = float(jnp.max(jnp.abs(out - ref)))
    assert jnp.allclose(out, ref, atol=2e-2, rtol=2e-2), f"cross-attn mismatch: {err}"

    # --- Test 2: self-attention (context = x), multi-kv-tile online-softmax path ---
    B2, N2 = 2, 192
    q_dim2, heads2, dim_head2 = 64, 2, 64
    kx2, kw2, key = jax.random.split(key, 3)
    x2 = jax.random.normal(kx2, (B2, N2, q_dim2), jnp.float32)
    wq2, wk2, wv2, wo2, bo2 = make_weights(kw2, q_dim2, q_dim2, heads2, dim_head2)

    out2 = cross_attention(x2, x2, wq2, wk2, wv2, wo2, bo2, heads=heads2, block_k=128)
    out2 = jax.block_until_ready(out2)
    ref2 = cross_attention_ref(x2, x2, wq2, wk2, wv2, wo2, bo2, heads2)
    err2 = float(jnp.max(jnp.abs(out2 - ref2)))
    assert jnp.allclose(out2, ref2, atol=2e-2, rtol=2e-2), f"self-attn mismatch: {err2}"

    print("KERNEL_OK")
</pallas_src>

<mosaic_0001>
module attributes {stable_mosaic.version = 11 : i64} {
  func.func @_linear_kernel(%arg0: i32, %arg1: memref<160x128xf32, #tpu.memory_space<vmem>>, %arg2: memref<128x256xbf16, #tpu.memory_space<vmem>>, %arg3: memref<1x256xf32, #tpu.memory_space<vmem>>, %arg4: memref<160x256xbf16, #tpu.memory_space<vmem>>) attributes {dimension_semantics = [#tpu.dimension_semantics<parallel>], iteration_bounds = array<i64: 1>, scalar_prefetch = 0 : i64, scratch_operands = 0 : i64, tpu.core_type = #tpu.core_type<tc>, window_params = [{transform_indices = @transform_0, window_bounds = array<i64: 160, 128>}, {pipeline_mode = #tpu.pipeline_mode<synchronous>, transform_indices = @transform_1, window_bounds = array<i64: 128, 256>}, {pipeline_mode = #tpu.pipeline_mode<synchronous>, transform_indices = @transform_2, window_bounds = array<i64: 1, 256>}, {transform_indices = @transform_3, window_bounds = array<i64: 160, 256>}]} {
    %c0 = arith.constant 0 : index
    %c0_0 = arith.constant 0 : index
    %0 = vector.load %arg1[%c0, %c0_0] : memref<160x128xf32, #tpu.memory_space<vmem>>, vector<160x128xf32>
    %1 = arith.truncf %0 : vector<160x128xf32> to vector<160x128xbf16>
    %c0_1 = arith.constant 0 : index
    %c0_2 = arith.constant 0 : index
    %2 = vector.load %arg2[%c0_1, %c0_2] : memref<128x256xbf16, #tpu.memory_space<vmem>>, vector<128x256xbf16>
    %cst = arith.constant dense<0.000000e+00> : vector<160x256xf32>
    %3 = tpu.matmul %1, %2, %cst {dimension_numbers = #tpu.dot_dimension_numbers<[1], [0], [0], [1], [0, 0, 1, 1], [], []>} : vector<160x128xbf16>, vector<128x256xbf16>, vector<160x256xf32> -> vector<160x256xf32>
    %c0_3 = arith.constant 0 : index
    %c0_4 = arith.constant 0 : index
    %4 = vector.load %arg3[%c0_3, %c0_4] : memref<1x256xf32, #tpu.memory_space<vmem>>, vector<1x256xf32>
    %5 = vector.broadcast %4 : vector<1x256xf32> to vector<160x256xf32>
    %6 = arith.addf %3, %5 : vector<160x256xf32>
    %7 = arith.truncf %6 : vector<160x256xf32> to vector<160x256xbf16>
    %c0_5 = arith.constant 0 : index
    %c0_6 = arith.constant 0 : index
    %8 = vector.load %arg4[%c0_5, %c0_6] : memref<160x256xbf16, #tpu.memory_space<vmem>>, vector<160x256xbf16>
    tpu.vector_store %arg4[%c0_5, %c0_6], %7 {strides = array<i32>} : memref<160x256xbf16, #tpu.memory_space<vmem>>, vector<160x256xbf16>,
    return
  }
  func.func @transform_0(%arg0: i32) -> (i32, i32) {
    %c0_i32 = arith.constant 0 : i32
    %c0_i32_0 = arith.constant 0 : i32
    return %arg0, %c0_i32 : i32, i32
  }
  func.func @transform_1(%arg0: i32) -> (i32, i32) {
    %c0_i32 = arith.constant 0 : i32
    %c0_i32_0 = arith.constant 0 : i32
    %c0_i32_1 = arith.constant 0 : i32
    return %c0_i32, %c0_i32_0 : i32, i32
  }
  func.func @transform_2(%arg0: i32) -> (i32, i32) {
    %c0_i32 = arith.constant 0 : i32
    %c0_i32_0 = arith.constant 0 : i32
    %c0_i32_1 = arith.constant 0 : i32
    return %c0_i32, %c0_i32_0 : i32, i32
  }
  func.func @transform_3(%arg0: i32) -> (i32, i32) {
    %c0_i32 = arith.constant 0 : i32
    %c0_i32_0 = arith.constant 0 : i32
    return %arg0, %c0_i32 : i32, i32
  }
}

module attributes {stable_mosaic.version = 11 : i64} {
  func.func @_linear_kernel(%arg0: i32, %arg1: memref<128x128xf32, #tpu.memory_space<vmem>>, %arg2: memref<128x128xbf16, #tpu.memory_space<vmem>>, %arg3: memref<1x128xf32, #tpu.memory_space<vmem>>, %arg4: memref<128x128xbf16, #tpu.memory_space<vmem>>) attributes {dimension_semantics = [#tpu.dimension_semantics<parallel>], iteration_bounds = array<i64: 1>, scalar_prefetch = 0 : i64, scratch_operands = 0 : i64, tpu.core_type = #tpu.core_type<tc>, window_params = [{transform_indices = @transform_0, window_bounds = array<i64: 128, 128>}, {pipeline_mode = #tpu.pipeline_mode<synchronous>, transform_indices = @transform_1, window_bounds = array<i64: 128, 128>}, {pipeline_mode = #tpu.pipeline_mode<synchronous>, transform_indices = @transform_2, window_bounds = array<i64: 1, 128>}, {transform_indices = @transform_3, window_bounds = array<i64: 128, 128>}]} {
    %c0 = arith.constant 0 : index
    %c0_0 = arith.constant 0 : index
    %0 = vector.load %arg1[%c0, %c0_0] : memref<128x128xf32, #tpu.memory_space<vmem>>, vector<128x128xf32>
    %1 = arith.truncf %0 : vector<128x128xf32> to vector<128x128xbf16>
    %c0_1 = arith.constant 0 : index
    %c0_2 = arith.constant 0 : index
    %2 = vector.load %arg2[%c0_1, %c0_2] : memref<128x128xbf16, #tpu.memory_space<vmem>>, vector<128x128xbf16>
    %cst = arith.constant dense<0.000000e+00> : vector<128x128xf32>
    %3 = tpu.matmul %1, %2, %cst {dimension_numbers = #tpu.dot_dimension_numbers<[1], [0], [0], [1], [0, 0, 1, 1], [], []>} : vector<128x128xbf16>, vector<128x128xbf16>, vector<128x128xf32> -> vector<128x128xf32>
    %c0_3 = arith.constant 0 : index
    %c0_4 = arith.constant 0 : index
    %4 = vector.load %arg3[%c0_3, %c0_4] : memref<1x128xf32, #tpu.memory_space<vmem>>, vector<1x128xf32>
    %5 = vector.broadcast %4 : vector<1x128xf32> to vector<128x128xf32>
    %6 = arith.addf %3, %5 : vector<128x128xf32>
    %7 = arith.truncf %6 : vector<128x128xf32> to vector<128x128xbf16>
    %c0_5 = arith.constant 0 : index
    %c0_6 = arith.constant 0 : index
    %8 = vector.load %arg4[%c0_5, %c0_6] : memref<128x128xbf16, #tpu.memory_space<vmem>>, vector<128x128xbf16>
    tpu.vector_store %arg4[%c0_5, %c0_6], %7 {strides = array<i32>} : memref<128x128xbf16, #tpu.memory_space<vmem>>, vector<128x128xbf16>,
    return
  }
  func.func @transform_0(%arg0: i32) -> (i32, i32) {
    %c0_i32 = arith.constant 0 : i32
    %c0_i32_0 = arith.constant 0 : i32
    return %arg0, %c0_i32 : i32, i32
  }
  func.func @transform_1(%arg0: i32) -> (i32, i32) {
    %c0_i32 = arith.constant 0 : i32
    %c0_i32_0 = arith.constant 0 : i32
    %c0_i32_1 = arith.constant 0 : i32
    return %c0_i32, %c0_i32_0 : i32, i32
  }
  func.func @transform_2(%arg0: i32) -> (i32, i32) {
    %c0_i32 = arith.constant 0 : i32
    %c0_i32_0 = arith.constant 0 : i32
    %c0_i32_1 = arith.constant 0 : i32
    return %c0_i32, %c0_i32_0 : i32, i32
  }
  func.func @transform_3(%arg0: i32) -> (i32, i32) {
    %c0_i32 = arith.constant 0 : i32
    %c0_i32_0 = arith.constant 0 : i32
    return %arg0, %c0_i32 : i32, i32
  }
}

module attributes {stable_mosaic.version = 11 : i64} {
  func.func @_attn_single_kv_kernel(%arg0: i32, %arg1: i32, %arg2: memref<1x64x128xbf16, #tpu.memory_space<vmem>>, %arg3: memref<1x80x256xbf16, #tpu.memory_space<vmem>>, %arg4: memref<1x64x128xbf16, #tpu.memory_space<vmem>>) attributes {dimension_semantics = [#tpu.dimension_semantics<parallel>, #tpu.dimension_semantics<parallel>], iteration_bounds = array<i64: 2, 1>, scalar_prefetch = 0 : i64, scratch_operands = 0 : i64, tpu.core_type = #tpu.core_type<tc>, window_params = [{transform_indices = @transform_0, window_bounds = array<i64: 1, 64, 128>}, {transform_indices = @transform_1, window_bounds = array<i64: 1, 80, 256>}, {transform_indices = @transform_2, window_bounds = array<i64: 1, 64, 128>}]} {
    %c0 = arith.constant 0 : index
    %c0_0 = arith.constant 0 : index
    %c0_1 = arith.constant 0 : index
    %0 = vector.load %arg2[%c0, %c0_0, %c0_1] : memref<1x64x128xbf16, #tpu.memory_space<vmem>>, vector<1x64x128xbf16>
    %1 = vector.shape_cast %0 : vector<1x64x128xbf16> to vector<64x128xbf16>
    %cst = arith.constant 1.250000e-01 : bf16
    %2 = vector.broadcast %cst : bf16 to vector<64x128xbf16>
    %3 = arith.mulf %1, %2 : vector<64x128xbf16>
    %c0_2 = arith.constant 0 : index
    %c0_3 = arith.constant 0 : index
    %c0_4 = arith.constant 0 : index
    %4 = vector.load %arg3[%c0_2, %c0_3, %c0_4] : memref<1x80x256xbf16, #tpu.memory_space<vmem>>, vector<1x80x256xbf16>
    %5 = vector.shape_cast %4 : vector<1x80x256xbf16> to vector<80x256xbf16>
    %6 = tpu.iota {dimensions = array<i32: 1>} : vector<64x80xi32>
    %c77_i32 = arith.constant 77 : i32
    %7 = vector.broadcast %c77_i32 : i32 to vector<64x80xi32>
    %8 = arith.cmpi slt, %6, %7 : vector<64x80xi32>
    %9 = vector.extract_strided_slice %3 {offsets = [0, 0], sizes = [64, 64], strides = [1, 1]} : vector<64x128xbf16> to vector<64x64xbf16>
    %10 = vector.extract_strided_slice %5 {offsets = [0, 0], sizes = [80, 64], strides = [1, 1]} : vector<80x256xbf16> to vector<80x64xbf16>
    %11 = vector.extract_strided_slice %5 {offsets = [0, 128], sizes = [80, 64], strides = [1, 1]} : vector<80x256xbf16> to vector<80x64xbf16>
    %cst_5 = arith.constant dense<0.000000e+00> : vector<64x80xf32>
    %12 = tpu.matmul %9, %10, %cst_5 {dimension_numbers = #tpu.dot_dimension_numbers<[1], [1], [0], [0], [0, 0, 1, 0], [], []>} : vector<64x64xbf16>, vector<80x64xbf16>, vector<64x80xf32> -> vector<64x80xf32>
    %cst_6 = arith.constant -3.40282347E+38 : f32
    %13 = vector.broadcast %cst_6 : f32 to vector<64x80xf32>
    %14 = arith.select %8, %12, %13 : vector<64x80xi1>, vector<64x80xf32>
    %cst_7 = arith.constant dense<0xFF800000> : vector<64xf32>
    %15 = vector.multi_reduction <maximumf>, %14, %cst_7 [1] : vector<64x80xf32> to vector<64xf32>
    %16 = vector.shape_cast %15 : vector<64xf32> to vector<64x1xf32>
    %17 = vector.broadcast %16 : vector<64x1xf32> to vector<64x80xf32>
    %18 = arith.subf %14, %17 : vector<64x80xf32>
    %19 = math.exp %18 : vector<64x80xf32>
    %cst_8 = arith.constant dense<0.000000e+00> : vector<64xf32>
    %20 = vector.multi_reduction <add>, %19, %cst_8 [1] : vector<64x80xf32> to vector<64xf32>
    %21 = vector.shape_cast %20 : vector<64xf32> to vector<64x1xf32>
    %22 = arith.truncf %19 : vector<64x80xf32> to vector<64x80xbf16>
    %cst_9 = arith.constant dense<0.000000e+00> : vector<64x64xf32>
    %23 = tpu.matmul %22, %11, %cst_9 {dimension_numbers = #tpu.dot_dimension_numbers<[1], [0], [0], [1], [0, 0, 1, 1], [], []>} : vector<64x80xbf16>, vector<80x64xbf16>, vector<64x64xf32> -> vector<64x64xf32>
    %24 = tpu.reciprocal %21 {approx = true} : vector<64x1xf32> -> vector<64x1xf32>
    %25 = vector.broadcast %24 : vector<64x1xf32> to vector<64x64xf32>
    %26 = arith.mulf %23, %25 : vector<64x64xf32>
    %27 = vector.extract_strided_slice %3 {offsets = [0, 64], sizes = [64, 64], strides = [1, 1]} : vector<64x128xbf16> to vector<64x64xbf16>
    %28 = vector.extract_strided_slice %5 {offsets = [0, 64], sizes = [80, 64], strides = [1, 1]} : vector<80x256xbf16> to vector<80x64xbf16>
    %29 = vector.extract_strided_slice %5 {offsets = [0, 192], sizes = [80, 64], strides = [1, 1]} : vector<80x256xbf16> to vector<80x64xbf16>
    %cst_10 = arith.constant dense<0.000000e+00> : vector<64x80xf32>
    %30 = tpu.matmul %27, %28, %cst_10 {dimension_numbers = #tpu.dot_dimension_numbers<[1], [1], [0], [0], [0, 0, 1, 0], [], []>} : vector<64x64xbf16>, vector<80x64xbf16>, vector<64x80xf32> -> vector<64x80xf32>
    %cst_11 = arith.constant -3.40282347E+38 : f32
    %31 = vector.broadcast %cst_11 : f32 to vector<64x80xf32>
    %32 = arith.select %8, %30, %31 : vector<64x80xi1>, vector<64x80xf32>
    %cst_12 = arith.constant dense<0xFF800000> : vector<64xf32>
    %33 = vector.multi_reduction <maximumf>, %32, %cst_12 [1] : vector<64x80xf32> to vector<64xf32>
    %34 = vector.shape_cast %33 : vector<64xf32> to vector<64x1xf32>
    %35 = vector.broadcast %34 : vector<64x1xf32> to vector<64x80xf32>
    %36 = arith.subf %32, %35 : vector<64x80xf32>
    %37 = math.exp %36 : vector<64x80xf32>
    %cst_13 = arith.constant dense<0.000000e+00> : vector<64xf32>
    %38 = vector.multi_reduction <add>, %37, %cst_13 [1] : vector<64x80xf32> to vector<64xf32>
    %39 = vector.shape_cast %38 : vector<64xf32> to vector<64x1xf32>
    %40 = arith.truncf %37 : vector<64x80xf32> to vector<64x80xbf16>
    %cst_14 = arith.constant dense<0.000000e+00> : vector<64x64xf32>
    %41 = tpu.matmul %40, %29, %cst_14 {dimension_numbers = #tpu.dot_dimension_numbers<[1], [0], [0], [1], [0, 0, 1, 1], [], []>} : vector<64x80xbf16>, vector<80x64xbf16>, vector<64x64xf32> -> vector<64x64xf32>
    %42 = tpu.reciprocal %39 {approx = true} : vector<64x1xf32> -> vector<64x1xf32>
    %43 = vector.broadcast %42 : vector<64x1xf32> to vector<64x64xf32>
    %44 = arith.mulf %41, %43 : vector<64x64xf32>
    %45 = tpu.concatenate %26, %44 in 1 : vector<64x64xf32>, vector<64x64xf32> -> vector<64x128xf32>
    %46 = arith.truncf %45 : vector<64x128xf32> to vector<64x128xbf16>
    %c0_15 = arith.constant 0 : index
    %c0_16 = arith.constant 0 : index
    %c0_17 = arith.constant 0 : index
    %47 = vector.load %arg4[%c0_15, %c0_16, %c0_17] : memref<1x64x128xbf16, #tpu.memory_space<vmem>>, vector<1x64x128xbf16>
    %48 = vector.shape_cast %47 : vector<1x64x128xbf16> to vector<64x128xbf16>
    %49 = vector.shape_cast %46 : vector<64x128xbf16> to vector<1x64x128xbf16>
    tpu.vector_store %arg4[%c0_15, %c0_16, %c0_17], %49 {strides = array<i32>} : memref<1x64x128xbf16, #tpu.memory_space<vmem>>, vector<1x64x128xbf16>,
    return
  }
  func.func @transform_0(%arg0: i32, %arg1: i32) -> (i32, i32, i32) {
    %c0_i32 = arith.constant 0 : i32
    %c0_i32_0 = arith.constant 0 : i32
    return %arg0, %arg1, %c0_i32 : i32, i32, i32
  }
  func.func @transform_1(%arg0: i32, %arg1: i32) -> (i32, i32, i32) {
    %c0_i32 = arith.constant 0 : i32
    %c0_i32_0 = arith.constant 0 : i32
    %c0_i32_1 = arith.constant 0 : i32
    return %arg0, %c0_i32, %c0_i32_0 : i32, i32, i32
  }
  func.func @transform_2(%arg0: i32, %arg1: i32) -> (i32, i32, i32) {
    %c0_i32 = arith.constant 0 : i32
    %c0_i32_0 = arith.constant 0 : i32
    return %arg0, %arg1, %c0_i32 : i32, i32, i32
  }
}

module attributes {stable_mosaic.version = 11 : i64} {
  func.func @_linear_kernel(%arg0: i32, %arg1: memref<128x128xbf16, #tpu.memory_space<vmem>>, %arg2: memref<128x128xbf16, #tpu.memory_space<vmem>>, %arg3: memref<1x128xf32, #tpu.memory_space<vmem>>, %arg4: memref<128x128xf32, #tpu.memory_space<vmem>>) attributes {dimension_semantics = [#tpu.dimension_semantics<parallel>], iteration_bounds = array<i64: 1>, scalar_prefetch = 0 : i64, scratch_operands = 0 : i64, tpu.core_type = #tpu.core_type<tc>, window_params = [{transform_indices = @transform_0, window_bounds = array<i64: 128, 128>}, {pipeline_mode = #tpu.pipeline_mode<synchronous>, transform_indices = @transform_1, window_bounds = array<i64: 128, 128>}, {pipeline_mode = #tpu.pipeline_mode<synchronous>, transform_indices = @transform_2, window_bounds = array<i64: 1, 128>}, {transform_indices = @transform_3, window_bounds = array<i64: 128, 128>}]} {
    %c0 = arith.constant 0 : index
    %c0_0 = arith.constant 0 : index
    %0 = vector.load %arg1[%c0, %c0_0] : memref<128x128xbf16, #tpu.memory_space<vmem>>, vector<128x128xbf16>
    %c0_1 = arith.constant 0 : index
    %c0_2 = arith.constant 0 : index
    %1 = vector.load %arg2[%c0_1, %c0_2] : memref<128x128xbf16, #tpu.memory_space<vmem>>, vector<128x128xbf16>
    %cst = arith.constant dense<0.000000e+00> : vector<128x128xf32>
    %2 = tpu.matmul %0, %1, %cst {dimension_numbers = #tpu.dot_dimension_numbers<[1], [0], [0], [1], [0, 0, 1, 1], [], []>} : vector<128x128xbf16>, vector<128x128xbf16>, vector<128x128xf32> -> vector<128x128xf32>
    %c0_3 = arith.constant 0 : index
    %c0_4 = arith.constant 0 : index
    %3 = vector.load %arg3[%c0_3, %c0_4] : memref<1x128xf32, #tpu.memory_space<vmem>>, vector<1x128xf32>
    %4 = vector.broadcast %3 : vector<1x128xf32> to vector<128x128xf32>
    %5 = arith.addf %2, %4 : vector<128x128xf32>
    %c0_5 = arith.constant 0 : index
    %c0_6 = arith.constant 0 : index
    %6 = vector.load %arg4[%c0_5, %c0_6] : memref<128x128xf32, #tpu.memory_space<vmem>>, vector<128x128xf32>
    tpu.vector_store %arg4[%c0_5, %c0_6], %5 {strides = array<i32>} : memref<128x128xf32, #tpu.memory_space<vmem>>, vector<128x128xf32>,
    return
  }
  func.func @transform_0(%arg0: i32) -> (i32, i32) {
    %c0_i32 = arith.constant 0 : i32
    %c0_i32_0 = arith.constant 0 : i32
    return %arg0, %c0_i32 : i32, i32
  }
  func.func @transform_1(%arg0: i32) -> (i32, i32) {
    %c0_i32 = arith.constant 0 : i32
    %c0_i32_0 = arith.constant 0 : i32
    %c0_i32_1 = arith.constant 0 : i32
    return %c0_i32, %c0_i32_0 : i32, i32
  }
  func.func @transform_2(%arg0: i32) -> (i32, i32) {
    %c0_i32 = arith.constant 0 : i32
    %c0_i32_0 = arith.constant 0 : i32
    %c0_i32_1 = arith.constant 0 : i32
    return %c0_i32, %c0_i32_0 : i32, i32
  }
  func.func @transform_3(%arg0: i32) -> (i32, i32) {
    %c0_i32 = arith.constant 0 : i32
    %c0_i32_0 = arith.constant 0 : i32
    return %arg0, %c0_i32 : i32, i32
  }
}

</mosaic_0001>

<bundles_post_ra>
// kernel: cross_attention.5
= control target key start
LH: loop header
LB: loop body
LE: loop exit
PB: predicated region body
PF: predicated region fallthrough
CT: control target
= control target key end

     0   :  { %v527_v1 = vmov 0   ;;  %v63_v47 = vlaneseq  ;;  %s773_s1 = inlined_call_operand.vmem [shape: bf16[128,256], index: 1, kind: input, shape index: {}]   ;;  %s774_s0 = inlined_call_operand.vmem [shape: f32[160,128], index: 0, kind: input, shape index: {}]   ;;  %s775_s2 = inlined_call_operand.vmem [shape: f32[1,256], index: 2, kind: input, shape index: {}]   ;;  %s776_s3 = inlined_call_operand.vmem [shape: bf16[160,256], index: 3, kind: output, shape index: {}]  }
   0x1   :  { %v503_v0 = vld [vmem:[%s773_s1 + $0x74] ss:$8 sps:$4 sm:$0xff]   ;;  %185 = vmatprep.mubr.bf16.mxu0 %v527_v1  ;;  %235 = vmatprep.mubr.bf16.mxu1 %v527_v1  ;;  %v505_v2 = vld [vmem:[%s773_s1 + $0x70] ss:$8 sps:$4 sm:$0xff]   ;;  %v506_v3 = vld [vmem:[%s773_s1 + $0x64] ss:$8 sps:$4 sm:$0xff]  }
   0x2   :  { %153 = vmatprep.subr.bf16.mxu0 %v503_v0  ;;  %486 = vmatprep.subr.bf16.mxu1 %v503_v0  ;;  %v508_v4 = vld [vmem:[%s773_s1 + $0x60] ss:$8 sps:$4 sm:$0xff]   ;;  %v509_v5 = vld [vmem:[%s773_s1 + $0x54] ss:$8 sps:$4 sm:$0xff]   ;;  %v511_v6 = vld [vmem:[%s773_s1 + $0x50] ss:$8 sps:$4 sm:$0xff]  }
   0x3   :  { %154 = vmatpush1.bf16.msra.mxu0 %v505_v2  ;;  %494 = vmatpush1.bf16.msra.mxu1 %v505_v2  ;;  %v512_v7 = vld [vmem:[%s773_s1 + $0x44] ss:$8 sps:$4 sm:$0xff]   ;;  %v514_v8 = vld [vmem:[%s773_s1 + $0x40] ss:$8 sps:$4 sm:$0xff]   ;;  %v515_v9 = vld [vmem:[%s773_s1 + $0x34] ss:$8 sps:$4 sm:$0xff]  }
   0x4   :  { %155 = vmatprep.subr.bf16.mxu0 %v506_v3  ;;  %487 = vmatprep.subr.bf16.mxu1 %v506_v3  ;;  %v517_v10 = vld [vmem:[%s773_s1 + $0x30] ss:$8 sps:$4 sm:$0xff]   ;;  %v518_v11 = vld [vmem:[%s773_s1 + $0x24] ss:$8 sps:$4 sm:$0xff]   ;;  %v520_v12 = vld [vmem:[%s773_s1 + $0x20] ss:$8 sps:$4 sm:$0xff]  }
   0x5   :  { %v521_v13 = vld [vmem:[%s773_s1 + $0x14] ss:$8 sps:$4 sm:$0xff]   ;;  %v523_v14 = vld [vmem:[%s773_s1 + $0x10] ss:$8 sps:$4 sm:$0xff]   ;;  %v524_v15 = vld [vmem:[%s773_s1 + $0x4] ss:$8 sps:$4 sm:$0xff]  }
   0x6   :  { %v526_v16 = vld [vmem:[%s773_s1] ss:$8 sps:$4 sm:$0xff]   ;;  %v25_v19 = vld [vmem:[%s774_s0 + $0x50] sm:$0xff]  ;;  %v26_v20 = vld [vmem:[%s774_s0 + $0x58] sm:$0xff]  ;;  %v64_v48 = vshrl.u32 %v63_v47, 7 }
   0x7   :  { %156 = vmatpush1.bf16.msra.mxu0 %v508_v4  ;;  %495 = vmatpush1.bf16.msra.mxu1 %v508_v4  ;;  %v15_v17 = vld [vmem:[%s774_s0] sm:$0xff]  ;;  %v16_v18 = vld [vmem:[%s774_s0 + $0x8] sm:$0xff]  ;;  %v40_v22 = vpack.c.bf16 %v26_v20, %v25_v19  ;;  %v17_v23 = vld [vmem:[%s774_s0 + $0x10] sm:$0xff] }
   0x8   :  { %157 = vmatprep.subr.bf16.mxu0 %v509_v5  ;;  %488 = vmatprep.subr.bf16.mxu1 %v509_v5  ;;  %v35_v21 = vpack.c.bf16 %v16_v18, %v15_v17  ;;  %v18_v24 = vld [vmem:[%s774_s0 + $0x18] sm:$0xff]  ;;  %v27_v25 = vld [vmem:[%s774_s0 + $0x60] sm:$0xff]  ;;  %v28_v26 = vld [vmem:[%s774_s0 + $0x68] sm:$0xff]  ;;  %v65_v49 = vsub.s32 0, %v64_v48  ;;  %v69_v50 = vsub.s32 1, %v64_v48 }
   0x9   :  { %v36_v27 = vpack.c.bf16 %v18_v24, %v17_v23  ;;  %v41_v28 = vpack.c.bf16 %v28_v26, %v27_v25  ;;  %v19_v29 = vld [vmem:[%s774_s0 + $0x20] sm:$0xff]  ;;  %v20_v30 = vld [vmem:[%s774_s0 + $0x28] sm:$0xff]  ;;  %v29_v31 = vld [vmem:[%s774_s0 + $0x70] sm:$0xff] }
   0xa   :  { %v30_v32 = vld [vmem:[%s774_s0 + $0x78] sm:$0xff]  ;;  %v37_v33 = vpack.c.bf16 %v20_v30, %v19_v29  ;;  %v21_v35 = vld [vmem:[%s774_s0 + $0x30] sm:$0xff]  ;;  %v31_v37 = vld [vmem:[%s774_s0 + $0x80] sm:$0xff] }
   0xb   :  { %158 = vmatpush1.bf16.msra.mxu0 %v511_v6  ;;  %496 = vmatpush1.bf16.msra.mxu1 %v511_v6  ;;  %v42_v34 = vpack.c.bf16 %v30_v32, %v29_v31  ;;  %v22_v36 = vld [vmem:[%s774_s0 + $0x38] sm:$0xff]  ;;  %v32_v38 = vld [vmem:[%s774_s0 + $0x88] sm:$0xff]  ;;  %v23_v41 = vld [vmem:[%s774_s0 + $0x40] sm:$0xff] }
   0xc   :  { %159 = vmatprep.subr.bf16.mxu0 %v512_v7  ;;  %489 = vmatprep.subr.bf16.mxu1 %v512_v7  ;;  %v38_v39 = vpack.c.bf16 %v22_v36, %v21_v35  ;;  %v43_v40 = vpack.c.bf16 %v32_v38, %v31_v37  ;;  %v24_v42 = vld [vmem:[%s774_s0 + $0x48] sm:$0xff]  ;;  %v33_v43 = vld [vmem:[%s774_s0 + $0x90] sm:$0xff]  ;;  %v34_v44 = vld [vmem:[%s774_s0 + $0x98] sm:$0xff] }
   0xd   :  { %v39_v45 = vpack.c.bf16 %v24_v42, %v23_v41  ;;  %v44_v46 = vpack.c.bf16 %v34_v44, %v33_v43  ;;  %v61_v51 = vld [vmem:[%s775_s2] sm:$0x3] }
   0xe   :  { %v669_v52 = vrot.slane %v61_v51, %v65_v49  ;;  %v671_v53 = vrot.slane %v61_v51, %v69_v50 }
   0xf   :  { %160 = vmatpush1.bf16.msra.mxu0 %v514_v8  ;;  %497 = vmatpush1.bf16.msra.mxu1 %v514_v8 }
  0x10   :  { %161 = vmatprep.subr.bf16.mxu0 %v515_v9  ;;  %490 = vmatprep.subr.bf16.mxu1 %v515_v9 }
  0x13   :  { %162 = vmatpush1.bf16.msra.mxu0 %v517_v10  ;;  %498 = vmatpush1.bf16.msra.mxu1 %v517_v10 }
  0x14   :  { %163 = vmatprep.subr.bf16.mxu0 %v518_v11  ;;  %491 = vmatprep.subr.bf16.mxu1 %v518_v11 }
  0x17   :  { %164 = vmatpush1.bf16.msra.mxu0 %v520_v12  ;;  %499 = vmatpush1.bf16.msra.mxu1 %v520_v12 }
  0x18   :  { %165 = vmatprep.subr.bf16.mxu0 %v521_v13  ;;  %492 = vmatprep.subr.bf16.mxu1 %v521_v13 }
  0x1b   :  { %166 = vmatpush1.bf16.msra.mxu0 %v523_v14  ;;  %500 = vmatpush1.bf16.msra.mxu1 %v523_v14 }
  0x1c   :  { %167 = vmatprep.subr.bf16.mxu0 %v524_v15  ;;  %493 = vmatprep.subr.bf16.mxu1 %v524_v15 }
  0x1f   :  { %168 = vmatpush1.bf16.msra.mxu0 %v526_v16  ;;  %501 = vmatpush1.bf16.msra.mxu1 %v526_v16 }
  0x22   :  { %186 = vmatmul.mubr.bf16.vlgmr.msra.gmra.mxu0 %v35_v21  ;;  %236 = vmatmul.mubr.bf16.vlgmr.msra.gmra.mxu1 %v40_v22 }
  0x23   :  { %195 = vmatprep.mubr.bf16.mxu0 %v527_v1  ;;  %245 = vmatprep.mubr.bf16.mxu1 %v527_v1 }
  0x2a   :  { %196 = vmatmul.mubr.bf16.gmra.mxu0 %v36_v27  ;;  %246 = vmatmul.mubr.bf16.gmra.mxu1 %v41_v28 }
  0x2b   :  { %205 = vmatprep.mubr.bf16.mxu0 %v527_v1  ;;  %255 = vmatprep.mubr.bf16.mxu1 %v527_v1 }
  0x32   :  { %206 = vmatmul.mubr.bf16.gmra.mxu0 %v37_v33  ;;  %256 = vmatmul.mubr.bf16.gmra.mxu1 %v42_v34 }
  0x33   :  { %215 = vmatprep.mubr.bf16.mxu0 %v527_v1  ;;  %265 = vmatprep.mubr.bf16.mxu1 %v527_v1 }
  0x3a   :  { %216 = vmatmul.mubr.bf16.gmra.mxu0 %v38_v39  ;;  %266 = vmatmul.mubr.bf16.gmra.mxu1 %v43_v40 }
  0x3b   :  { %225 = vmatprep.mubr.bf16.mxu0 %v527_v1  ;;  %275 = vmatprep.mubr.bf16.mxu1 %v527_v1 }
  0x42   :  { %226 = vmatmul.mubr.bf16.gmra.mxu0 %v39_v45  ;;  %276 = vmatmul.mubr.bf16.gmra.mxu1 %v44_v46 }
  0xe2   :  { %v187_v54 = vpop.f32.mrf.mxu0  ;;  %v237_v55 = vpop.f32.mrf.mxu1 }
  0xe3   :  { %v188_v58 = vadd.f32 %v187_v54, %v669_v52  ;;  %v238_v59 = vadd.f32 %v237_v55, %v669_v52 }
  0xe4   :  { %v189_v56 = vpop.f32.mrf.mxu0  ;;  %v239_v57 = vpop.f32.mrf.mxu1 }
  0xe5   :  { %v190_v60 = vadd.f32 %v189_v56, %v671_v53  ;;  %v240_v61 = vadd.f32 %v239_v57, %v671_v53 }
  0xe6   :  { %v191_v62 = vpop.f32.mrf.mxu0  ;;  %v241_v63 = vpop.f32.mrf.mxu1 }
  0xe7   :  { %v466_v0 = vpack.c.bf16 %v190_v60, %v188_v58  ;;  %v476_v1 = vpack.c.bf16 %v240_v61, %v238_v59  ;;  %v192_v4 = vadd.f32 %v191_v62, %v669_v52  ;;  %v242_v5 = vadd.f32 %v241_v63, %v669_v52 }
  0xe8   :  { %v193_v2 = vpop.f32.mrf.mxu0  ;;  %v243_v3 = vpop.f32.mrf.mxu1 }
  0xe9   :  { %406 = vst [vmem:[%s776_s3] sm:$0xff] %v466_v0  ;;  %416 = vst [vmem:[%s776_s3 + $0x50] sm:$0xff] %v476_v1  ;;  %v194_v6 = vadd.f32 %v193_v2, %v671_v53  ;;  %v244_v7 = vadd.f32 %v243_v3, %v671_v53 }
  0xea   :  { %v197_v8 = vpop.f32.mrf.mxu0  ;;  %v247_v9 = vpop.f32.mrf.mxu1 }
  0xeb   :  { %v467_v10 = vpack.c.bf16 %v194_v6, %v192_v4  ;;  %v477_v11 = vpack.c.bf16 %v244_v7, %v242_v5  ;;  %v198_v14 = vadd.f32 %v197_v8, %v669_v52  ;;  %v248_v15 = vadd.f32 %v247_v9, %v669_v52 }
  0xec   :  { %v199_v12 = vpop.f32.mrf.mxu0  ;;  %v249_v13 = vpop.f32.mrf.mxu1 }
  0xed   :  { %407 = vst [vmem:[%s776_s3 + $0x8] sm:$0xff] %v467_v10  ;;  %417 = vst [vmem:[%s776_s3 + $0x58] sm:$0xff] %v477_v11  ;;  %v200_v16 = vadd.f32 %v199_v12, %v671_v53  ;;  %v250_v17 = vadd.f32 %v249_v13, %v671_v53 }
  0xee   :  { %v201_v18 = vpop.f32.mrf.mxu0  ;;  %v251_v19 = vpop.f32.mrf.mxu1 }
  0xef   :  { %v468_v20 = vpack.c.bf16 %v200_v16, %v198_v14  ;;  %v478_v21 = vpack.c.bf16 %v250_v17, %v248_v15  ;;  %v202_v24 = vadd.f32 %v201_v18, %v669_v52  ;;  %v252_v25 = vadd.f32 %v251_v19, %v669_v52 }
  0xf0   :  { %v203_v22 = vpop.f32.mrf.mxu0  ;;  %v253_v23 = vpop.f32.mrf.mxu1 }
  0xf1   :  { %408 = vst [vmem:[%s776_s3 + $0x10] sm:$0xff] %v468_v20  ;;  %418 = vst [vmem:[%s776_s3 + $0x60] sm:$0xff] %v478_v21  ;;  %v204_v26 = vadd.f32 %v203_v22, %v671_v53  ;;  %v254_v27 = vadd.f32 %v253_v23, %v671_v53 }
  0xf2   :  { %v207_v28 = vpop.f32.mrf.mxu0  ;;  %v257_v29 = vpop.f32.mrf.mxu1 }
  0xf3   :  { %v469_v30 = vpack.c.bf16 %v204_v26, %v202_v24  ;;  %v479_v31 = vpack.c.bf16 %v254_v27, %v252_v25  ;;  %v208_v34 = vadd.f32 %v207_v28, %v669_v52  ;;  %v258_v35 = vadd.f32 %v257_v29, %v669_v52 }
  0xf4   :  { %v209_v32 = vpop.f32.mrf.mxu0  ;;  %v259_v33 = vpop.f32.mrf.mxu1 }
  0xf5   :  { %409 = vst [vmem:[%s776_s3 + $0x18] sm:$0xff] %v469_v30  ;;  %419 = vst [vmem:[%s776_s3 + $0x68] sm:$0xff] %v479_v31  ;;  %v210_v36 = vadd.f32 %v209_v32, %v671_v53  ;;  %v260_v37 = vadd.f32 %v259_v33, %v671_v53 }
  0xf6   :  { %v211_v38 = vpop.f32.mrf.mxu0  ;;  %v261_v39 = vpop.f32.mrf.mxu1 }
  0xf7   :  { %v470_v40 = vpack.c.bf16 %v210_v36, %v208_v34  ;;  %v480_v41 = vpack.c.bf16 %v260_v37, %v258_v35  ;;  %v212_v44 = vadd.f32 %v211_v38, %v669_v52  ;;  %v262_v45 = vadd.f32 %v261_v39, %v669_v52 }
  0xf8   :  { %v213_v42 = vpop.f32.mrf.mxu0  ;;  %v263_v43 = vpop.f32.mrf.mxu1 }
  0xf9   :  { %410 = vst [vmem:[%s776_s3 + $0x20] sm:$0xff] %v470_v40  ;;  %420 = vst [vmem:[%s776_s3 + $0x70] sm:$0xff] %v480_v41  ;;  %v214_v46 = vadd.f32 %v213_v42, %v671_v53  ;;  %v264_v47 = vadd.f32 %v263_v43, %v671_v53 }
  0xfa   :  { %v217_v48 = vpop.f32.mrf.mxu0  ;;  %v267_v49 = vpop.f32.mrf.mxu1 }
  0xfb   :  { %v471_v50 = vpack.c.bf16 %v214_v46, %v212_v44  ;;  %v481_v51 = vpack.c.bf16 %v264_v47, %v262_v45  ;;  %v218_v56 = vadd.f32 %v217_v48, %v669_v52  ;;  %v268_v57 = vadd.f32 %v267_v49, %v669_v52 }
  0xfc   :  { %v219_v54 = vpop.f32.mrf.mxu0  ;;  %v269_v55 = vpop.f32.mrf.mxu1 }
  0xfd   :  { %411 = vst [vmem:[%s776_s3 + $0x28] sm:$0xff] %v471_v50  ;;  %421 = vst [vmem:[%s776_s3 + $0x78] sm:$0xff] %v481_v51  ;;  %v220_v58 = vadd.f32 %v219_v54, %v671_v53  ;;  %v270_v59 = vadd.f32 %v269_v55, %v671_v53 }
  0xfe   :  { %v221_v60 = vpop.f32.mrf.mxu0  ;;  %v271_v61 = vpop.f32.mrf.mxu1 }
  0xff   :  { %v472_v62 = vpack.c.bf16 %v220_v58, %v218_v56  ;;  %v482_v63 = vpack.c.bf16 %v270_v59, %v268_v57  ;;  %v222_v2 = vadd.f32 %v221_v60, %v669_v52  ;;  %v272_v3 = vadd.f32 %v271_v61, %v669_v52 }
 0x100   :  { %v223_v0 = vpop.f32.mrf.mxu0  ;;  %v273_v1 = vpop.f32.mrf.mxu1 }
 0x101   :  { %412 = vst [vmem:[%s776_s3 + $0x30] sm:$0xff] %v472_v62  ;;  %422 = vst [vmem:[%s776_s3 + $0x80] sm:$0xff] %v482_v63  ;;  %v224_v4 = vadd.f32 %v223_v0, %v671_v53  ;;  %v274_v5 = vadd.f32 %v273_v1, %v671_v53 }
 0x102   :  { %v227_v6 = vpop.f32.mrf.mxu0  ;;  %v277_v7 = vpop.f32.mrf.mxu1 }
 0x103   :  { %v473_v8 = vpack.c.bf16 %v224_v4, %v222_v2  ;;  %v483_v9 = vpack.c.bf16 %v274_v5, %v272_v3  ;;  %v228_v12 = vadd.f32 %v227_v6, %v669_v52  ;;  %v278_v13 = vadd.f32 %v277_v7, %v669_v52 }
 0x104   :  { %v229_v10 = vpop.f32.mrf.mxu0  ;;  %v279_v11 = vpop.f32.mrf.mxu1 }
 0x105   :  { %413 = vst [vmem:[%s776_s3 + $0x38] sm:$0xff] %v473_v8  ;;  %423 = vst [vmem:[%s776_s3 + $0x88] sm:$0xff] %v483_v9  ;;  %v230_v14 = vadd.f32 %v229_v10, %v671_v53  ;;  %v280_v15 = vadd.f32 %v279_v11, %v671_v53 }
 0x106   :  { %v231_v16 = vpop.f32.mrf.mxu0  ;;  %v281_v17 = vpop.f32.mrf.mxu1 }
 0x107   :  { %v474_v18 = vpack.c.bf16 %v230_v14, %v228_v12  ;;  %v484_v19 = vpack.c.bf16 %v280_v15, %v278_v13  ;;  %v232_v22 = vadd.f32 %v231_v16, %v669_v52  ;;  %v282_v23 = vadd.f32 %v281_v17, %v669_v52 }
 0x108   :  { %v233_v20 = vpop.f32.mrf.mxu0  ;;  %v283_v21 = vpop.f32.mrf.mxu1 }
 0x109   :  { %414 = vst [vmem:[%s776_s3 + $0x40] sm:$0xff] %v474_v18  ;;  %424 = vst [vmem:[%s776_s3 + $0x90] sm:$0xff] %v484_v19  ;;  %v234_v24 = vadd.f32 %v233_v20, %v671_v53  ;;  %v284_v25 = vadd.f32 %v283_v21, %v671_v53 }
 0x10b   :  { %v475_v26 = vpack.c.bf16 %v234_v24, %v232_v22  ;;  %v485_v27 = vpack.c.bf16 %v284_v25, %v282_v23 }
 0x10d   :  { %415 = vst [vmem:[%s776_s3 + $0x48] sm:$0xff] %v475_v26  ;;  %425 = vst [vmem:[%s776_s3 + $0x98] sm:$0xff] %v485_v27 }

// kernel: cross_attention.4
= control target key start
LH: loop header
LB: loop body
LE: loop exit
PB: predicated region body
PF: predicated region fallthrough
CT: control target
= control target key end

     0   :  { %s570_s1 = inlined_call_operand.vmem [shape: bf16[128,128], index: 1, kind: input, shape index: {}]   ;;  %s571_s0 = inlined_call_operand.vmem [shape: f32[128,128], index: 0, kind: input, shape index: {}]   ;;  %s572_s2 = inlined_call_operand.vmem [shape: f32[1,128], index: 2, kind: input, shape index: {}]   ;;  %s573_s3 = inlined_call_operand.vmem [shape: bf16[128,128], index: 3, kind: output, shape index: {}]  }
   0x1   :  { %v443_v0 = vld [vmem:[%s570_s1 + $0x38] sm:$0xff]   ;;  %v444_v1 = vld [vmem:[%s570_s1 + $0x30] sm:$0xff]   ;;  %v445_v2 = vld [vmem:[%s570_s1 + $0x28] sm:$0xff]  }
   0x2   :  { %395 = vmatprep.subr.bf16.mxu0 %v443_v0  ;;  %427 = vmatprep.subr.bf16.mxu1 %v443_v0  ;;  %v446_v3 = vld [vmem:[%s570_s1 + $0x20] sm:$0xff]   ;;  %v16_v5 = vld [vmem:[%s571_s0 + $0x8] sm:$0xff]  ;;  %v447_v10 = vld [vmem:[%s570_s1 + $0x18] sm:$0xff]  }
   0x3   :  { %396 = vmatpush3.bf16.msra.mxu0 %v443_v0  ;;  %435 = vmatpush3.bf16.msra.mxu1 %v443_v0  ;;  %v15_v4 = vld [vmem:[%s571_s0] sm:$0xff]  ;;  %v24_v8 = vld [vmem:[%s571_s0 + $0x48] sm:$0xff]  ;;  %v448_v11 = vld [vmem:[%s570_s1 + $0x10] sm:$0xff]  }
   0x4   :  { %397 = vmatprep.subr.bf16.mxu0 %v444_v1  ;;  %428 = vmatprep.subr.bf16.mxu1 %v444_v1  ;;  %v23_v6 = vld [vmem:[%s571_s0 + $0x40] sm:$0xff]  ;;  %v31_v7 = vpack.c.bf16 %v16_v5, %v15_v4  ;;  %v449_v12 = vld [vmem:[%s570_s1 + $0x8] sm:$0xff]   ;;  %v17_v14 = vld [vmem:[%s571_s0 + $0x10] sm:$0xff] }
   0x5   :  { %v35_v9 = vpack.c.bf16 %v24_v8, %v23_v6  ;;  %v450_v13 = vld [vmem:[%s570_s1] sm:$0xff]   ;;  %v18_v15 = vld [vmem:[%s571_s0 + $0x18] sm:$0xff]  ;;  %v25_v16 = vld [vmem:[%s571_s0 + $0x50] sm:$0xff] }
   0x6   :  { %411 = vmatprep.mubr.bf16.mxu0 %v31_v7  ;;  %v26_v17 = vld [vmem:[%s571_s0 + $0x58] sm:$0xff]  ;;  %v19_v18 = vld [vmem:[%s571_s0 + $0x20] sm:$0xff]  ;;  %v20_v19 = vld [vmem:[%s571_s0 + $0x28] sm:$0xff]  ;;  %v32_v22 = vpack.c.bf16 %v18_v15, %v17_v14 }
   0x7   :  { %398 = vmatpush3.bf16.msra.mxu0 %v444_v1  ;;  %436 = vmatpush3.bf16.msra.mxu1 %v444_v1  ;;  %v27_v20 = vld [vmem:[%s571_s0 + $0x60] sm:$0xff]  ;;  %v28_v21 = vld [vmem:[%s571_s0 + $0x68] sm:$0xff]  ;;  %v36_v23 = vpack.c.bf16 %v26_v17, %v25_v16  ;;  %v33_v24 = vpack.c.bf16 %v20_v19, %v19_v18  ;;  %v21_v26 = vld [vmem:[%s571_s0 + $0x30] sm:$0xff] }
   0x8   :  { %399 = vmatprep.subr.bf16.mxu0 %v445_v2  ;;  %429 = vmatprep.subr.bf16.mxu1 %v445_v2  ;;  %v37_v25 = vpack.c.bf16 %v28_v21, %v27_v20  ;;  %v22_v27 = vld [vmem:[%s571_s0 + $0x38] sm:$0xff]  ;;  %v29_v28 = vld [vmem:[%s571_s0 + $0x70] sm:$0xff]  ;;  %v291_v34 = vld [vmem:[%s572_s2] ss:$0 sm:$0xff] }
   0x9   :  { %419 = vmatprep.mubr.bf16.mxu1 %v35_v9  ;;  %v30_v29 = vld [vmem:[%s571_s0 + $0x78] sm:$0xff]  ;;  %v34_v30 = vpack.c.bf16 %v22_v27, %v21_v26 }
   0xa   :  { %v38_v31 = vpack.c.bf16 %v30_v29, %v29_v28 }
   0xb   :  { %400 = vmatpush3.bf16.msra.mxu0 %v445_v2  ;;  %437 = vmatpush3.bf16.msra.mxu1 %v445_v2 }
   0xc   :  { %401 = vmatprep.subr.bf16.mxu0 %v446_v3  ;;  %430 = vmatprep.subr.bf16.mxu1 %v446_v3 }
   0xf   :  { %402 = vmatpush3.bf16.msra.mxu0 %v446_v3  ;;  %438 = vmatpush3.bf16.msra.mxu1 %v446_v3 }
  0x10   :  { %403 = vmatprep.subr.bf16.mxu0 %v447_v10  ;;  %431 = vmatprep.subr.bf16.mxu1 %v447_v10 }
  0x13   :  { %404 = vmatpush3.bf16.msra.mxu0 %v447_v10  ;;  %439 = vmatpush3.bf16.msra.mxu1 %v447_v10 }
  0x14   :  { %405 = vmatprep.subr.bf16.mxu0 %v448_v11  ;;  %432 = vmatprep.subr.bf16.mxu1 %v448_v11 }
  0x17   :  { %406 = vmatpush3.bf16.msra.mxu0 %v448_v11  ;;  %440 = vmatpush3.bf16.msra.mxu1 %v448_v11 }
  0x18   :  { %407 = vmatprep.subr.bf16.mxu0 %v449_v12  ;;  %433 = vmatprep.subr.bf16.mxu1 %v449_v12 }
  0x1b   :  { %408 = vmatpush3.bf16.msra.mxu0 %v449_v12  ;;  %441 = vmatpush3.bf16.msra.mxu1 %v449_v12 }
  0x1c   :  { %409 = vmatprep.subr.bf16.mxu0 %v450_v13  ;;  %434 = vmatprep.subr.bf16.mxu1 %v450_v13 }
  0x1f   :  { %410 = vmatpush3.bf16.msra.mxu0 %v450_v13  ;;  %442 = vmatpush3.bf16.msra.mxu1 %v450_v13 }
  0x22   :  { %412 = vmatmul.mubr.bf16.vlgmr.msra.gmra.mxu0 %v32_v22  ;;  %420 = vmatmul.mubr.bf16.vlgmr.msra.gmra.mxu1 %v36_v23 }
  0x23   :  { %415 = vmatprep.mubr.bf16.mxu0 %v33_v24  ;;  %423 = vmatprep.mubr.bf16.mxu1 %v37_v25 }
  0x2a   :  { %416 = vmatmul.mubr.bf16.gmra.mxu0 %v34_v30  ;;  %424 = vmatmul.mubr.bf16.gmra.mxu1 %v38_v31 }
  0xe2   :  { %v413_v32 = vpop.f32.mrf.mxu0  ;;  %v421_v33 = vpop.f32.mrf.mxu1 }
  0xe3   :  { %v153_v39 = vadd.f32 %v413_v32, %v291_v34  ;;  %v185_v40 = vadd.f32 %v421_v33, %v291_v34 }
  0xe4   :  { %v144_v35 = vpop.f32.mrf.mxu0  ;;  %v176_v36 = vpop.f32.mrf.mxu1 }
  0xe5   :  { %v145_v43 = vadd.f32 %v291_v34, %v144_v35  ;;  %v177_v44 = vadd.f32 %v291_v34, %v176_v36 }
  0xe6   :  { %v414_v37 = vpop.f32.mrf.mxu0  ;;  %v422_v38 = vpop.f32.mrf.mxu1 }
  0xe7   :  { %v156_v41 = vadd.f32 %v414_v37, %v291_v34  ;;  %v188_v42 = vadd.f32 %v422_v38, %v291_v34 }
  0xe8   :  { %v147_v45 = vpop.f32.mrf.mxu0  ;;  %v179_v46 = vpop.f32.mrf.mxu1 }
  0xe9   :  { %v340_v47 = vpack.c.bf16 %v156_v41, %v153_v39  ;;  %v360_v48 = vpack.c.bf16 %v188_v42, %v185_v40  ;;  %v148_v49 = vadd.f32 %v291_v34, %v147_v45  ;;  %v180_v50 = vadd.f32 %v291_v34, %v179_v46 }
  0xea   :  { %v417_v51 = vpop.f32.mrf.mxu0  ;;  %v425_v52 = vpop.f32.mrf.mxu1 }
  0xeb   :  { %372 = vst [vmem:[%s573_s3 + $0x8] sm:$0xff] %v340_v47   ;;  %376 = vst [vmem:[%s573_s3 + $0x28] sm:$0xff] %v360_v48   ;;  %v335_v53 = vpack.c.bf16 %v148_v49, %v145_v43  ;;  %v355_v54 = vpack.c.bf16 %v180_v50, %v177_v44  ;;  %v169_v59 = vadd.f32 %v417_v51, %v291_v34 }
  0xec   :  { %v160_v55 = vpop.f32.mrf.mxu0  ;;  %v192_v56 = vpop.f32.mrf.mxu1  ;;  %v201_v60 = vadd.f32 %v425_v52, %v291_v34 }
  0xed   :  { %336 = vst [vmem:[%s573_s3] sm:$0xff] %v335_v53   ;;  %375 = vst [vmem:[%s573_s3 + $0x20] sm:$0xff] %v355_v54   ;;  %v161_v63 = vadd.f32 %v291_v34, %v160_v55  ;;  %v193_v0 = vadd.f32 %v291_v34, %v192_v56 }
  0xee   :  { %v418_v57 = vpop.f32.mrf.mxu0  ;;  %v426_v58 = vpop.f32.mrf.mxu1 }
  0xef   :  { %v172_v61 = vadd.f32 %v418_v57, %v291_v34  ;;  %v204_v62 = vadd.f32 %v426_v58, %v291_v34 }
  0xf0   :  { %v163_v1 = vpop.f32.mrf.mxu0  ;;  %v195_v2 = vpop.f32.mrf.mxu1 }
  0xf1   :  { %v350_v3 = vpack.c.bf16 %v172_v61, %v169_v59  ;;  %v370_v4 = vpack.c.bf16 %v204_v62, %v201_v60  ;;  %v164_v5 = vadd.f32 %v291_v34, %v163_v1  ;;  %v196_v6 = vadd.f32 %v291_v34, %v195_v2 }
  0xf3   :  { %374 = vst [vmem:[%s573_s3 + $0x18] sm:$0xff] %v350_v3   ;;  %378 = vst [vmem:[%s573_s3 + $0x38] sm:$0xff] %v370_v4   ;;  %v345_v7 = vpack.c.bf16 %v164_v5, %v161_v63  ;;  %v365_v8 = vpack.c.bf16 %v196_v6, %v193_v0 }
  0xf5   :  { %373 = vst [vmem:[%s573_s3 + $0x10] sm:$0xff] %v345_v7   ;;  %377 = vst [vmem:[%s573_s3 + $0x30] sm:$0xff] %v365_v8  }

// kernel: cross_attention.6
= control target key start
LH: loop header
LB: loop body
LE: loop exit
PB: predicated region body
PF: predicated region fallthrough
CT: control target
= control target key end

     0   :  { %s1417_s9 = smov 0   ;;  %s1419_s10 = smov 0   ;;  %s1739_s0 = inlined_call_operand.vmem [shape: bf16[2,64,128], index: 0, kind: input, shape index: {}]   ;;  %s1740_s1 = inlined_call_operand.vmem [shape: bf16[2,80,256], index: 1, kind: input, shape index: {}]   ;;  %s1741_s2 = inlined_call_operand.vmem [shape: bf16[2,64,128], index: 2, kind: output, shape index: {}]  }
   0x1   :  { %s1421_s11 = smov 0  }
   0x2 LB: > { %s24_s12 = sadd.s32 1, %s1395_s10  ;;  %p1055_p0 = scmp.ge.s32.totalorder %s1399_s11, 1  ;;  %s1399_s11 = sphi %s1421_s11, %s12_s11   ;;  %s1395_s10 = sphi %s1419_s10, %s1743_s10   ;;  %s1391_s9 = sphi %s1417_s9, %s1742_s9  }
   0x3   : > { %p26_p1 = scmp.ge.s32.totalorder %s24_s12, 2  ;;  %p143_p2 = scmp.lt.s32.totalorder %s1399_s11, 3 }
   0x5   : > { %s1745_s12 = smov (%p26_p1, %s24_s12), 0  ;;  %p144_p3 = pnand %p1055_p0, %p143_p2 }
   0x6   : > { %p179_p4 = scmp.lt.s32.totalorder (!%p144_p3), %s1391_s9, 1  ;;  %s1401_s21 = smov (!%p144_p3), 64  }
   0x7   : > { %147 = sbr.rel (%p144_p3) target bundleno = 1189 (0x4a5), region = 28 }
   0xc   : > { %s1747_s9 = smov (!%p179_p4, %s1391_s9), 1  ;;  %vm279_vm0 = vcmask 523264   ;;  %v231_v30 = vlaneseq  ;;  %vm380_vm2 = vcmask 654336  }
   0xd   : > { %s1252_s13 = smul.u32 80, %s1747_s9  ;;  %s1101_s14 = sshll.u32 %s1747_s9, 5 }
   0xe   : > { %s1444_s17 = scalar_lea.vmem %s1739_s0, %s1101_s14  ;;  %v1504_v31 = vand.u32 127, %v231_v30  ;;  %s1712_s24 = scalar_lea.vmem %s1741_s2, %s1101_s14 }
   0xf   : > { %s1449_s20 = scalar_lea.vmem %s1740_s1, %s1252_s13  ;;  %v205_v0 = vld [vmem:[%s1444_s17] sm:$0xf]  ;;  %v206_v1 = vld [vmem:[%s1444_s17 + $0x4] sm:$0xf]  ;;  %v207_v14 = vld [vmem:[%s1444_s17 + $0x8] sm:$0xf] }
  0x10   : > { %v1454_v2 = vld [vmem:[%s1449_s20 + $0x40] ss:$8 sps:$4 sm:$0xff]   ;;  %v213_v3 = vmul.bf16 1040203264, %v205_v0  ;;  %v1457_v4 = vld [vmem:[%s1449_s20 + $0x30] ss:$8 sps:$4 sm:$0xff]  }
  0x11   : > { %v214_v5 = vmul.bf16 1040203264, %v206_v1  ;;  %1242 = vmatprep.subr.msk.bf16.mxu0 %vm279_vm0, %v1454_v2  ;;  %v305_v6 = vsel %vm279_vm0, %v1454_v2, 0  ;;  %v302_v8 = vsel %vm279_vm0, %v1457_v4, 0  ;;  %v1472_v9 = vld [vmem:[%s1449_s20 + $0x20] ss:$8 sps:$4 sm:$0xff]  }
  0x12   : > { %1171 = vmatpush3.bf16.xpose.msra.mxu0 %v305_v6  ;;  %v299_v10 = vsel %vm279_vm0, %v1472_v9, 0  ;;  %v1479_v11 = vld [vmem:[%s1449_s20 + $0x10] ss:$8 sps:$4 sm:$0xff]   ;;  %v1486_v13 = vld [vmem:[%s1449_s20] ss:$8 sps:$4 sm:$0xff]   ;;  %vm233_vm1 = vcmp.lt.s32.totalorder %v1504_v31, 77 }
  0x13   : > { %v1463_v7 = vcombine.low %v213_v3, %v214_v5  ;;  %1243 = vmatprep.subr.msk.bf16.mxu0 %vm279_vm0, %v1457_v4  ;;  %v296_v12 = vsel %vm279_vm0, %v1479_v11, 0  ;;  %v208_v15 = vld [vmem:[%s1444_s17 + $0xc] sm:$0xf]  ;;  %v293_v16 = vsel %vm279_vm0, %v1486_v13, 0  ;;  %v209_v17 = vld [vmem:[%s1444_s17 + $0x10] sm:$0xf] }
  0x14   : > { %v210_v18 = vld [vmem:[%s1444_s17 + $0x14] sm:$0xf]  ;;  %v215_v19 = vmul.bf16 1040203264, %v207_v14  ;;  %v216_v20 = vmul.bf16 1040203264, %v208_v15 }
  0x15   : > { %1180 = vmatprep.mubr.msk.bf16.mxu0 %vm279_vm0, %v1463_v7  ;;  %v217_v21 = vmul.bf16 1040203264, %v209_v17  ;;  %v218_v22 = vmul.bf16 1040203264, %v210_v18  ;;  %v211_v25 = vld [vmem:[%s1444_s17 + $0x18] sm:$0xf] }
  0x16   : > { %v1062_v23 = vcombine.low %v215_v19, %v216_v20  ;;  %v212_v26 = vld [vmem:[%s1444_s17 + $0x1c] sm:$0xf]  ;;  %v219_v27 = vmul.bf16 1040203264, %v211_v25  ;;  %v1308_v50 = vld [vmem:[%s1449_s20 + $0x44] ss:$8 sps:$4 sm:$0xff]  }
  0x17   : > { %v1496_v24 = vcombine.low %v217_v21, %v218_v22  ;;  %v220_v28 = vmul.bf16 1040203264, %v212_v26  ;;  %1188 = vmatprep.subr.bf16.mxu1 %v1308_v50  ;;  %v1536_v51 = vld [vmem:[%s1449_s20 + $0x34] ss:$8 sps:$4 sm:$0xff]   ;;  %v1543_v52 = vld [vmem:[%s1449_s20 + $0x24] ss:$8 sps:$4 sm:$0xff]  }
  0x18   : > { %1189 = vmatpush3.bf16.msra.mxu1 %v1308_v50  ;;  %v1550_v53 = vld [vmem:[%s1449_s20 + $0x14] ss:$8 sps:$4 sm:$0xff]   ;;  %v1554_v54 = vld [vmem:[%s1449_s20 + $0x4] ss:$8 sps:$4 sm:$0xff]  }
  0x19   : > { %v1064_v29 = vcombine.low %v219_v27, %v220_v28  ;;  %1190 = vmatprep.subr.bf16.mxu1 %v1536_v51 }
  0x1a   : > { %1173 = vmatpush3.bf16.xpose.msra.mxu0 %v302_v8 }
  0x1b   : > { %1244 = vmatprep.subr.msk.bf16.mxu0 %vm279_vm0, %v1472_v9 }
  0x1c   : > { %1191 = vmatpush3.bf16.msra.mxu1 %v1536_v51 }
  0x1d   : > { %1192 = vmatprep.subr.bf16.mxu1 %v1543_v52 }
  0x20   : > { %1193 = vmatpush3.bf16.msra.mxu1 %v1543_v52 }
  0x21   : > { %1194 = vmatprep.subr.bf16.mxu1 %v1550_v53 }
  0x22   : > { %1175 = vmatpush3.bf16.xpose.msra.mxu0 %v299_v10 }
  0x23   : > { %1245 = vmatprep.subr.msk.bf16.mxu0 %vm279_vm0, %v1479_v11 }
  0x24   : > { %1195 = vmatpush3.bf16.msra.mxu1 %v1550_v53 }
  0x25   : > { %1196 = vmatprep.subr.bf16.mxu1 %v1554_v54 }
  0x28   : > { %1197 = vmatpush3.bf16.msra.mxu1 %v1554_v54 }
  0x2a   : > { %1177 = vmatpush3.bf16.xpose.msra.mxu0 %v296_v12 }
  0x2b   : > { %1246 = vmatprep.subr.msk.bf16.mxu0 %vm279_vm0, %v1486_v13 }
  0x32   : > { %1179 = vmatpush3.bf16.xpose.msra.mxu0 %v293_v16 }
  0x39   : > { %1181 = vmatmul.mubr.msk.bf16.vlgmr.msra.gmra.mxu0 %vm279_vm0, %v1062_v23 }
  0x3a   : > { %1184 = vmatprep.mubr.msk.bf16.mxu0 %vm279_vm0, %v1496_v24 }
  0x41   : > { %1185 = vmatmul.mubr.msk.bf16.gmra.mxu0 %vm279_vm0, %v1064_v29 }
  0xf9   : > { %v1182_v32 = vpop.f32.mrf.mxu0 }
  0xfa   : > { %v1509_v33 = vsel %vm233_vm1, %v1182_v32, -3.4028235e+38 }
  0xfb   : > { %v341_v34 = vpop.f32.mrf.mxu0  ;;  %v387_v35 = vsel %vm380_vm2, %v1509_v33, -inf }
  0xfc   : > { %v372_v36 = vsel %vm233_vm1, %v341_v34, -3.4028235e+38  ;;  %388 = vmax.xlane.f32.xlu1 %v387_v35 }
  0xfd   : > { %v1183_v37 = vpop.f32.mrf.mxu0  ;;  %v381_v38 = vsel %vm380_vm2, %v372_v36, -inf }
  0xfe   : > { %v375_v39 = vsel %vm233_vm1, %v1183_v37, -3.4028235e+38  ;;  %382 = vmax.xlane.f32.xlu0 %v381_v38 }
  0xff   : > { %v344_v40 = vpop.f32.mrf.mxu0  ;;  %v390_v41 = vsel %vm380_vm2, %v375_v39, -inf }
 0x100   : > { %v373_v42 = vsel %vm233_vm1, %v344_v40, -3.4028235e+38  ;;  %391 = vmax.xlane.f32.xlu1 %v390_v41 }
 0x101   : > { %v384_v43 = vsel %vm380_vm2, %v373_v42, -inf  ;;  %v1186_v44 = vpop.f32.mrf.mxu0 }
 0x102   : > { %385 = vmax.xlane.f32.xlu0 %v384_v43  ;;  %v1524_v45 = vsel %vm233_vm1, %v1186_v44, -3.4028235e+38 }
 0x103   : > { %v399_v46 = vsel %vm380_vm2, %v1524_v45, -inf  ;;  %v357_v47 = vpop.f32.mrf.mxu0 }
 0x104   : > { %v1530_v48 = vsel %vm233_vm1, %v357_v47, -3.4028235e+38 }
 0x105   : > { %v393_v49 = vsel %vm380_vm2, %v1530_v48, -inf  ;;  %v1187_v55 = vpop.f32.mrf.mxu0 }
 0x106   : > { %400 = vmax.xlane.f32.xlu0 %v399_v46  ;;  %v379_v56 = vsel %vm233_vm1, %v1187_v55, -3.4028235e+38 }
 0x107   : > { %v360_v57 = vpop.f32.mrf.mxu0  ;;  %v402_v58 = vsel %vm380_vm2, %v379_v56, -inf }
 0x108   : > { %v377_v59 = vsel %vm233_vm1, %v360_v57, -3.4028235e+38 }
 0x109   : > { %v396_v60 = vsel %vm380_vm2, %v377_v59, -inf }
 0x10a   : > { %394 = vmax.xlane.f32.xlu0 %v393_v49 }
 0x111   : > { %584 = vrot.lane.b32.xlu1 %v1457_v4, %s1401_s21 }
 0x115   : > { %582 = vrot.lane.b32.xlu1 %v1472_v9, %s1401_s21 }
 0x120   : > { %586 = vrot.lane.b32.xlu0 %v1454_v2, %s1401_s21 }
 0x124   : > { %578 = vrot.lane.b32.xlu0 %v1486_v13, %s1401_s21 }
 0x128   : > { %572 = vrot.lane.b32.xlu0 %v1062_v23, %s1401_s21 }
 0x12c   : > { %576 = vrot.lane.b32.xlu0 %v1064_v29, %s1401_s21 }
 0x139   : > { %403 = vmax.xlane.f32.xlu1 %v402_v58 }
 0x13d   : > { %397 = vmax.xlane.f32.xlu1 %v396_v60 }
 0x14e   : > { %580 = vrot.lane.b32.xlu1 %v1479_v11, %s1401_s21 }
 0x152   : > { %570 = vrot.lane.b32.xlu1 %v1463_v7, %s1401_s21 }
 0x156   : > { %574 = vrot.lane.b32.xlu1 %v1496_v24, %s1401_s21 }
 0x15a   : > { %772 = vrot.lane.b32.xlu1 %v1308_v50, %s1401_s21 }
 0x185   : > { %v389_v61 = vpop.xlane.xlu1 %388 }
 0x186   : > { %v407_v0 = vsub.f32 %v1509_v33, %v389_v61 }
 0x187   : > { %v383_v62 = vpop.xlane.xlu0 %382 }
 0x188   : > { %v405_v63 = vsub.f32 %v372_v36, %v383_v62  ;;  %v417_v8 = vmul.f32 1.442695, %v407_v0 }
 0x189   : > { %v392_v1 = vpop.xlane.xlu1 %391 }
 0x18a   : > { %v413_v2 = vmul.f32 1.442695, %v405_v63  ;;  %v408_v3 = vsub.f32 %v375_v39, %v392_v1 }
 0x18b   : > { %v386_v4 = vpop.xlane.xlu0 %385 }
 0x18c   : > { %v419_v5 = vmul.f32 1.442695, %v408_v3  ;;  %v406_v6 = vsub.f32 %v373_v42, %v386_v4  ;;  %1313 = vpow2.f32 %v413_v2 }
 0x18d   : > { %v585_v19 = vpop.permute.xlu1 %584 }
 0x18e   : > { %v415_v9 = vmul.f32 1.442695, %v406_v6  ;;  %1315 = vpow2.f32 %v419_v5  ;;  %v610_v20 = vsel %vm279_vm0, %v585_v19, 0 }
 0x18f   : > { %v401_v7 = vpop.xlane.xlu0 %400 }
 0x190   : > { %1317 = vpow2.f32 %v415_v9  ;;  %v411_v26 = vsub.f32 %v1524_v45, %v401_v7 }
 0x191   : > { %1319 = vpow2.f32 %v417_v8  ;;  %v583_v21 = vpop.permute.xlu1 %582 }
 0x192   : > { %v607_v22 = vsel %vm279_vm0, %v583_v21, 0  ;;  %v425_v32 = vmul.f32 1.442695, %v411_v26 }
 0x193   : > { %v395_v10 = vpop.xlane.xlu0 %394 }
 0x194   : > { %v409_v23 = vsub.f32 %v1530_v48, %v395_v10 }
 0x196   : > { %v421_v27 = vmul.f32 1.442695, %v409_v23 }
 0x197   : > { %v587_v11 = vpop.permute.xlu0 %586 }
 0x198   : > { %1247 = vmatprep.subr.msk.bf16.mxu1 %vm279_vm0, %v587_v11  ;;  %v613_v17 = vsel %vm279_vm0, %v587_v11, 0  ;;  %1321 = vpow2.f32 %v421_v27 }
 0x199   : > { %v1580_v12 = vpop.eup %1313 }
 0x19b   : > { %v1582_v13 = vpop.eup %1315  ;;  %v579_v35 = vpop.permute.xlu0 %578 }
 0x19c   : > { %v601_v37 = vsel %vm279_vm0, %v579_v35, 0 }
 0x19d   : > { %v1584_v14 = vpop.eup %1317 }
 0x19e   : > { %v1586_v15 = vpop.eup %1319  ;;  %v453_v16 = vpack.c.bf16 %v1584_v14, %v1580_v12 }
 0x19f   : > { %v454_v18 = vpack.c.bf16 %v1582_v13, %v1586_v15  ;;  %v573_v45 = vpop.permute.xlu0 %572 }
 0x1a0   : > { %1198 = vmatprep.mubr.msk.bf16.mxu1 %vm380_vm2, %v453_v16 }
 0x1a1   : > { %1199 = vmatmul.mubr.msk.bf16.vlgmr.msra.gmra.mxu1 %vm380_vm2, %v454_v18 }
 0x1a2   : > { %1207 = vmatpush3.bf16.xpose.msra.mxu1 %v613_v17 }
 0x1a3   : > { %1248 = vmatprep.subr.msk.bf16.mxu1 %vm279_vm0, %v585_v19  ;;  %v577_v47 = vpop.permute.xlu0 %576 }
 0x1a5   : > { %v1605_v38 = vpop.eup %1321 }
 0x1aa   : > { %1209 = vmatpush3.bf16.xpose.msra.mxu1 %v610_v20 }
 0x1ab   : > { %1249 = vmatprep.subr.msk.bf16.mxu1 %vm279_vm0, %v583_v21 }
 0x1b2   : > { %1211 = vmatpush3.bf16.xpose.msra.mxu1 %v607_v22 }
 0x1c2   : > { %v404_v24 = vpop.xlane.xlu1 %403 }
 0x1c3   : > { %v412_v25 = vsub.f32 %v379_v56, %v404_v24 }
 0x1c5   : > { %v427_v28 = vmul.f32 1.442695, %v412_v25 }
 0x1c6   : > { %v398_v29 = vpop.xlane.xlu1 %397 }
 0x1c7   : > { %v410_v30 = vsub.f32 %v377_v59, %v398_v29  ;;  %1323 = vpow2.f32 %v427_v28 }
 0x1c9   : > { %v423_v33 = vmul.f32 1.442695, %v410_v30 }
 0x1ca   : > { %v581_v34 = vpop.permute.xlu1 %580 }
 0x1cb   : > { %1325 = vpow2.f32 %v423_v33  ;;  %v604_v36 = vsel %vm279_vm0, %v581_v34, 0  ;;  %1250 = vmatprep.subr.msk.bf16.mxu1 %vm279_vm0, %v581_v34 }
 0x1cc   : > { %1327 = vpow2.f32 %v425_v32  ;;  %1213 = vmatpush3.bf16.xpose.msra.mxu1 %v604_v36 }
 0x1cd   : > { %1251 = vmatprep.subr.msk.bf16.mxu1 %vm279_vm0, %v579_v35 }
 0x1ce   : > { %v571_v44 = vpop.permute.xlu1 %570 }
 0x1d2   : > { %v575_v46 = vpop.permute.xlu1 %574 }
 0x1d4   : > { %1215 = vmatpush3.bf16.xpose.msra.mxu1 %v601_v37  ;;  %v1607_v39 = vpop.eup %1323 }
 0x1d6   : > { %v773_v48 = vpop.permute.xlu1 %772 }
 0x1d7   : > { %1224 = vmatprep.subr.bf16.mxu0 %v773_v48 }
 0x1d8   : > { %v1609_v40 = vpop.eup %1325  ;;  %1225 = vmatpush3.bf16.msra.mxu0 %v773_v48 }
 0x1d9   : > { %v1611_v41 = vpop.eup %1327  ;;  %v455_v42 = vpack.c.bf16 %v1609_v40, %v1605_v38 }
 0x1da   : > { %v456_v43 = vpack.c.bf16 %v1607_v39, %v1611_v41 }
 0x1db   : > { %1202 = vmatprep.mubr.msk.bf16.mxu1 %vm380_vm2, %v455_v42 }
 0x1dc   : > { %1203 = vmatmul.mubr.msk.bf16.gmra.mxu1 %vm380_vm2, %v456_v43 }
 0x1dd   : > { %1216 = vmatprep.mubr.msk.bf16.mxu1 %vm279_vm0, %v571_v44 }
 0x1e4   : > { %1217 = vmatmul.mubr.msk.bf16.vlgmr.msra.gmra.mxu1 %vm279_vm0, %v573_v45 }
 0x1e5   : > { %1220 = vmatprep.mubr.msk.bf16.mxu1 %vm279_vm0, %v575_v46 }
 0x1ec   : > { %1221 = vmatmul.mubr.msk.bf16.gmra.mxu1 %vm279_vm0, %v577_v47 }
 0x261   : > { %v1623_v49 = vpop.f32.mrf.mxu1 }
 0x263   : > { %v1625_v50 = vpop.f32.mrf.mxu1 }
 0x265   : > { %v1627_v55 = vpop.f32.mrf.mxu1 }
 0x267   : > { %v1629_v56 = vpop.f32.mrf.mxu1 }
 0x29c   : > { %v1631_v57 = vpop.f32.mrf.mxu1 }
 0x29e   : > { %v1633_v58 = vpop.f32.mrf.mxu1 }
 0x2a0   : > { %v1635_v59 = vpop.f32.mrf.mxu1 }
 0x2a2   : > { %v1637_v60 = vpop.f32.mrf.mxu1 }
 0x2a4   : > { %v1218_v61 = vpop.f32.mrf.mxu1 }
 0x2a5   : > { %v682_v62 = vsel %vm233_vm1, %v1218_v61, -3.4028235e+38 }
 0x2a6   : > { %v649_v63 = vpop.f32.mrf.mxu1  ;;  %v694_v0 = vsel %vm380_vm2, %v682_v62, -inf }
 0x2a7   : > { %v680_v1 = vsel %vm233_vm1, %v649_v63, -3.4028235e+38  ;;  %695 = vmax.xlane.f32.xlu0 %v694_v0 }
 0x2a8   : > { %v1219_v2 = vpop.f32.mrf.mxu1  ;;  %v688_v3 = vsel %vm380_vm2, %v680_v1, -inf }
 0x2a9   : > { %v683_v4 = vsel %vm233_vm1, %v1219_v2, -3.4028235e+38  ;;  %689 = vmax.xlane.f32.xlu1 %v688_v3 }
 0x2aa   : > { %v652_v5 = vpop.f32.mrf.mxu1  ;;  %v697_v6 = vsel %vm380_vm2, %v683_v4, -inf }
 0x2ab   : > { %v681_v8 = vsel %vm233_vm1, %v652_v5, -3.4028235e+38  ;;  %698 = vmax.xlane.f32.xlu0 %v697_v6 }
 0x2ac   : > { %v1222_v9 = vpop.f32.mrf.mxu1  ;;  %v691_v11 = vsel %vm380_vm2, %v681_v8, -inf }
 0x2ad   : > { %v686_v7 = vsel %vm233_vm1, %v1222_v9, -3.4028235e+38 }
 0x2ae   : > { %v665_v10 = vpop.f32.mrf.mxu1  ;;  %v706_v16 = vsel %vm380_vm2, %v686_v7, -inf }
 0x2af   : > { %v684_v17 = vsel %vm233_vm1, %v665_v10, -3.4028235e+38  ;;  %692 = vmax.xlane.f32.xlu0 %v691_v11  ;;  %707 = vmax.xlane.f32.xlu1 %v706_v16 }
 0x2b0   : > { %v1223_v18 = vpop.f32.mrf.mxu1  ;;  %v700_v21 = vsel %vm380_vm2, %v684_v17, -inf }
 0x2b1   : > { %v687_v19 = vsel %vm233_vm1, %v1223_v18, -3.4028235e+38 }
 0x2b2   : > { %v668_v20 = vpop.f32.mrf.mxu1  ;;  %v709_v22 = vsel %vm380_vm2, %v687_v19, -inf }
 0x2b3   : > { %v685_v23 = vsel %vm233_vm1, %v668_v20, -3.4028235e+38  ;;  %701 = vmax.xlane.f32.xlu1 %v700_v21  ;;  %710 = vmax.xlane.f32.xlu0 %v709_v22 }
 0x2b4   : > { %v703_v24 = vsel %vm380_vm2, %v685_v23, -inf }
 0x2b7   : > { %704 = vmax.xlane.f32.xlu0 %v703_v24  ;;  %v429_v24 = vsel %vm380_vm2, %v1580_v12, 0.0  ;;  %v444_v12 = vsel %vm380_vm2, %v1609_v40, 0.0 }
 0x2c4   : > { %768 = vrot.lane.b32.xlu1 %v1543_v52, %s1401_s21 }
 0x2c8   : > { %766 = vrot.lane.b32.xlu1 %v1550_v53, %s1401_s21 }
 0x2cc   : > { %764 = vrot.lane.b32.xlu1 %v1554_v54, %s1401_s21 }
 0x2cd   : > { %770 = vrot.lane.b32.xlu0 %v1536_v51, %s1401_s21 }
 0x330   : > { %v696_v25 = vpop.xlane.xlu0 %695 }
 0x331   : > { %v714_v31 = vsub.f32 %v682_v62, %v696_v25  ;;  %v432_v25 = vsel %vm380_vm2, %v1584_v14, 0.0  ;;  %v447_v14 = vsel %vm380_vm2, %v1611_v41, 0.0 }
 0x332   : > { %v690_v26 = vpop.xlane.xlu1 %689 }
 0x333   : > { %v724_v27 = vmul.f32 1.442695, %v714_v31  ;;  %v712_v28 = vsub.f32 %v680_v1, %v690_v26  ;;  %v435_v26 = vsel %vm380_vm2, %v1586_v15, 0.0  ;;  %v450_v15 = vsel %vm380_vm2, %v1607_v39, 0.0 }
 0x334   : > { %v699_v29 = vpop.xlane.xlu0 %698 }
 0x335   : > { %1329 = vpow2.f32 %v724_v27  ;;  %v720_v30 = vmul.f32 1.442695, %v712_v28  ;;  %v715_v32 = vsub.f32 %v683_v4, %v699_v29  ;;  %v438_v27 = vsel %vm380_vm2, %v1582_v13, 0.0 }
 0x336   : > { %v441_v28 = vsel %vm380_vm2, %v1605_v38, 0.0 }
 0x337   : > { %1331 = vpow2.f32 %v720_v30  ;;  %v726_v52 = vmul.f32 1.442695, %v715_v32 }
 0x338   : > { %v693_v33 = vpop.xlane.xlu0 %692  ;;  %v708_v34 = vpop.xlane.xlu1 %707 }
 0x339   : > { %v713_v53 = vsub.f32 %v681_v8, %v693_v33  ;;  %1333 = vpow2.f32 %v726_v52  ;;  %v718_v54 = vsub.f32 %v686_v7, %v708_v34 }
 0x33b   : > { %v722_v35 = vmul.f32 1.442695, %v713_v53  ;;  %v732_v44 = vmul.f32 1.442695, %v718_v54 }
 0x33c   : > { %v711_v36 = vpop.xlane.xlu0 %710  ;;  %v702_v37 = vpop.xlane.xlu1 %701 }
 0x33d   : > { %1335 = vpow2.f32 %v722_v35  ;;  %v716_v51 = vsub.f32 %v684_v17, %v702_v37  ;;  %v719_v42 = vsub.f32 %v687_v19, %v711_v36 }
 0x33f   : > { %v728_v43 = vmul.f32 1.442695, %v716_v51  ;;  %v734_v61 = vmul.f32 1.442695, %v719_v42 }
 0x340   : > { %v705_v45 = vpop.xlane.xlu0 %704  ;;  %v769_v46 = vpop.permute.xlu1 %768 }
 0x341   : > { %v717_v47 = vsub.f32 %v685_v23, %v705_v45  ;;  %1337 = vpow2.f32 %v728_v43 }
 0x342   : > { %v1330_v48 = vpop.eup %1329  ;;  %1339 = vpow2.f32 %v732_v44 }
 0x343   : > { %v730_v62 = vmul.f32 1.442695, %v717_v47  ;;  %v742_v63 = vsel %vm380_vm2, %v1330_v48, 0.0 }
 0x344   : > { %v1332_v0 = vpop.eup %1331  ;;  %743 = vadd.xlane.f32.xlu0 %v742_v63  ;;  %v771_v1 = vpop.permute.xlu0 %770 }
 0x345   : > { %1341 = vpow2.f32 %v730_v62  ;;  %1226 = vmatprep.subr.bf16.mxu0 %v771_v1  ;;  %v767_v2 = vpop.permute.xlu1 %766  ;;  %v736_v3 = vsel %vm380_vm2, %v1332_v0, 0.0 }
 0x346   : > { %1227 = vmatpush3.bf16.msra.mxu0 %v771_v1  ;;  %1343 = vpow2.f32 %v734_v61  ;;  %v1334_v4 = vpop.eup %1333 }
 0x347   : > { %1228 = vmatprep.subr.bf16.mxu0 %v769_v46  ;;  %v745_v8 = vsel %vm380_vm2, %v1334_v4, 0.0  ;;  %v761_v18 = vpack.c.bf16 %v1334_v4, %v1330_v48 }
 0x348   : > { %737 = vadd.xlane.f32.xlu0 %v736_v3 }
 0x349   : > { %v765_v7 = vpop.permute.xlu1 %764 }
 0x34a   : > { %v1336_v5 = vpop.eup %1335  ;;  %1229 = vmatpush3.bf16.msra.mxu0 %v769_v46 }
 0x34b   : > { %v739_v6 = vsel %vm380_vm2, %v1336_v5, 0.0  ;;  %1230 = vmatprep.subr.bf16.mxu0 %v767_v2  ;;  %v760_v9 = vpack.c.bf16 %v1336_v5, %v1332_v0 }
 0x34c   : > { %740 = vadd.xlane.f32.xlu1 %v739_v6  ;;  %746 = vadd.xlane.f32.xlu0 %v745_v8 }
 0x34d   : > { %1234 = vmatprep.mubr.msk.bf16.mxu0 %vm380_vm2, %v760_v9 }
 0x34e   : > { %1231 = vmatpush3.bf16.msra.mxu0 %v767_v2  ;;  %v1338_v10 = vpop.eup %1337 }
 0x34f   : > { %1232 = vmatprep.subr.bf16.mxu0 %v765_v7  ;;  %v748_v11 = vsel %vm380_vm2, %v1338_v10, 0.0  ;;  %v1340_v16 = vpop.eup %1339 }
 0x350   : > { %749 = vadd.xlane.f32.xlu0 %v748_v11  ;;  %v754_v22 = vsel %vm380_vm2, %v1340_v16, 0.0 }
 0x352   : > { %v1342_v17 = vpop.eup %1341  ;;  %1233 = vmatpush3.bf16.msra.mxu0 %v765_v7 }
 0x353   : > { %v751_v19 = vsel %vm380_vm2, %v1342_v17, 0.0  ;;  %v762_v20 = vpack.c.bf16 %v1342_v17, %v1338_v10  ;;  %v1344_v21 = vpop.eup %1343 }
 0x354   : > { %752 = vadd.xlane.f32.xlu1 %v751_v19  ;;  %755 = vadd.xlane.f32.xlu0 %v754_v22  ;;  %v757_v23 = vsel %vm380_vm2, %v1344_v21, 0.0  ;;  %v763_v31 = vpack.c.bf16 %v1344_v21, %v1340_v16 }
 0x355   : > { %1235 = vmatmul.mubr.msk.bf16.vlgmr.msra.gmra.mxu0 %vm380_vm2, %v761_v18 }
 0x356   : > { %1238 = vmatprep.mubr.msk.bf16.mxu0 %vm380_vm2, %v762_v20 }
 0x358   : > { %758 = vadd.xlane.f32.xlu1 %v757_v23  ;;  %430 = vadd.xlane.f32.xlu0 %v429_v24 }
 0x35c   : > { %433 = vadd.xlane.f32.xlu1 %v432_v25  ;;  %436 = vadd.xlane.f32.xlu0 %v435_v26 }
 0x35d   : > { %1239 = vmatmul.mubr.msk.bf16.gmra.mxu0 %vm380_vm2, %v763_v31 }
 0x360   : > { %439 = vadd.xlane.f32.xlu1 %v438_v27  ;;  %442 = vadd.xlane.f32.xlu0 %v441_v28 }
 0x364   : > { %445 = vadd.xlane.f32.xlu1 %v444_v12  ;;  %448 = vadd.xlane.f32.xlu0 %v447_v14 }
 0x368   : > { %451 = vadd.xlane.f32.xlu1 %v450_v15 }
 0x3cd   : > { %v744_v29 = vpop.xlane.xlu0 %743 }
 0x3ce   : > { %1345 = vrcp.f32 %v744_v29 }
 0x3d1   : > { %v738_v30 = vpop.xlane.xlu0 %737 }
 0x3d5   : > { %v747_v13 = vpop.xlane.xlu0 %746  ;;  %v741_v32 = vpop.xlane.xlu1 %740 }
 0x3d6   : > { %1347 = vrcp.f32 %v747_v13 }
 0x3d7   : > { %1349 = vrcp.f32 %v738_v30 }
 0x3d8   : > { %1351 = vrcp.f32 %v741_v32 }
 0x3d9   : > { %v750_v52 = vpop.xlane.xlu0 %749 }
 0x3da   : > { %1353 = vrcp.f32 %v750_v52 }
 0x3db   : > { %v1346_v53 = vpop.eup %1345 }
 0x3dd   : > { %v753_v38 = vpop.xlane.xlu1 %752  ;;  %v756_v41 = vpop.xlane.xlu0 %755 }
 0x3de   : > { %1355 = vrcp.f32 %v753_v38 }
 0x3e1   : > { %v759_v40 = vpop.xlane.xlu1 %758  ;;  %v431_v7 = vpop.xlane.xlu0 %430 }
 0x3e2   : > { %1357 = vrcp.f32 %v759_v40 }
 0x3e3   : > { %v1348_v39 = vpop.eup %1347  ;;  %1359 = vrcp.f32 %v756_v41 }
 0x3e4   : > { %v1350_v54 = vpop.eup %1349  ;;  %1361 = vrcp.f32 %v431_v7 }
 0x3e5   : > { %v1352_v51 = vpop.eup %1351  ;;  %v434_v10 = vpop.xlane.xlu1 %433 }
 0x3e6   : > { %v437_v11 = vpop.xlane.xlu0 %436 }
 0x3e7   : > { %v1354_v62 = vpop.eup %1353  ;;  %1363 = vrcp.f32 %v437_v11 }
 0x3e9   : > { %v440_v16 = vpop.xlane.xlu1 %439 }
 0x3ea   : > { %1365 = vrcp.f32 %v440_v16  ;;  %v443_v17 = vpop.xlane.xlu0 %442 }
 0x3eb   : > { %v1356_v63 = vpop.eup %1355  ;;  %1367 = vrcp.f32 %v434_v10 }
 0x3ec   : > { %1369 = vrcp.f32 %v443_v17 }
 0x3ed   : > { %v446_v18 = vpop.xlane.xlu1 %445 }
 0x3ee   : > { %v449_v19 = vpop.xlane.xlu0 %448  ;;  %1371 = vrcp.f32 %v446_v18 }
 0x3ef   : > { %v1358_v3 = vpop.eup %1357  ;;  %1373 = vrcp.f32 %v449_v19 }
 0x3f0   : > { %v1360_v6 = vpop.eup %1359 }
 0x3f1   : > { %v1362_v20 = vpop.eup %1361  ;;  %v452_v21 = vpop.xlane.xlu1 %451 }
 0x3f2   : > { %1375 = vrcp.f32 %v452_v21  ;;  %v562_v12 = vmul.f32 %v1362_v20, %v1625_v50 }
 0x3f4   : > { %v1364_v22 = vpop.eup %1363 }
 0x3f5   : > { %v564_v31 = vmul.f32 %v1364_v22, %v1623_v49 }
 0x3f7   : > { %v1366_v23 = vpop.eup %1365 }
 0x3f8   : > { %v1368_v24 = vpop.eup %1367  ;;  %v565_v26 = vmul.f32 %v1366_v23, %v1627_v55 }
 0x3f9   : > { %v563_v15 = vmul.f32 %v1368_v24, %v1629_v56  ;;  %v1370_v38 = vpop.eup %1369 }
 0x3fa   : > { %v566_v41 = vmul.f32 %v1370_v38, %v1633_v58 }
 0x3fb   : > { %v1372_v52 = vpop.eup %1371 }
 0x415   : > { %v1236_v33 = vpop.f32.mrf.mxu0 }
 0x416   : > { %v866_v36 = vmul.f32 %v1346_v53, %v1236_v33  ;;  %v1374_v33 = vpop.eup %1373 }
 0x417   : > { %v825_v34 = vpop.f32.mrf.mxu0 }
 0x418   : > { %v864_v43 = vmul.f32 %v1350_v54, %v825_v34  ;;  %v567_v34 = vmul.f32 %v1372_v52, %v1637_v60 }
 0x419   : > { %v1237_v35 = vpop.f32.mrf.mxu0 }
 0x41a   : > { %v867_v37 = vmul.f32 %v1348_v39, %v1237_v35  ;;  %v1376_v35 = vpop.eup %1375 }
 0x41b   : > { %v828_v42 = vpop.f32.mrf.mxu0 }
 0x41c   : > { %v1283_v44 = vpack.i.bf16 %v867_v37, %v866_v36  ;;  %v865_v45 = vmul.f32 %v1352_v51, %v828_v42  ;;  %v568_v42 = vmul.f32 %v1374_v33, %v1631_v57 }
 0x41d   : > { %v1240_v46 = vpop.f32.mrf.mxu0 }
 0x41e   : > { %v1278_v47 = vpack.i.bf16 %v865_v45, %v864_v43  ;;  %1284 = vrot.lane.b32.xlu1 %v1283_v44, %s1401_s21  ;;  %v870_v8 = vmul.f32 %v1360_v6, %v1240_v46  ;;  %v569_v43 = vmul.f32 %v1376_v35, %v1635_v59 }
 0x41f   : > { %v841_v48 = vpop.f32.mrf.mxu0 }
 0x420   : > { %1279 = vrot.lane.b32.xlu0 %v1278_v47, %s1401_s21  ;;  %v868_v1 = vmul.f32 %v1354_v62, %v841_v48 }
 0x421   : > { %v1241_v61 = vpop.f32.mrf.mxu0 }
 0x422   : > { %v871_v4 = vmul.f32 %v1358_v3, %v1241_v61 }
 0x423   : > { %v844_v0 = vpop.f32.mrf.mxu0 }
 0x424   : > { %v869_v2 = vmul.f32 %v1356_v63, %v844_v0  ;;  %v1293_v9 = vpack.i.bf16 %v871_v4, %v870_v8 }
 0x426   : > { %v1288_v5 = vpack.i.bf16 %v869_v2, %v868_v1 }
 0x428   : > { %1289 = vrot.lane.b32.xlu1 %v1288_v5, %s1401_s21 }
 0x42c   : > { %1294 = vrot.lane.b32.xlu1 %v1293_v9, %s1401_s21 }
 0x490   : > { %v1285_v25 = vpop.permute.xlu1 %1284 }
 0x491   : > { %v1287_v27 = vunpack.i.h.bf16 %v1285_v25  ;;  %v1286_v28 = vunpack.i.l.bf16 %v1285_v25 }
 0x492   : > { %v1280_v14 = vpop.permute.xlu0 %1279 }
 0x493   : > { %v907_v29 = vsel %vm279_vm0, %v565_v26, %v1287_v27  ;;  %v906_v49 = vsel %vm279_vm0, %v564_v31, %v1286_v28  ;;  %v1282_v55 = vunpack.i.h.bf16 %v1280_v14  ;;  %v1281_v30 = vunpack.i.l.bf16 %v1280_v14 }
 0x494   : > { %v1119_v13 = vpack.c.bf16 %v907_v29, %v906_v49 }
 0x495   : > { %v904_v50 = vsel %vm279_vm0, %v562_v12, %v1281_v30  ;;  %v905_v32 = vsel %vm279_vm0, %v563_v15, %v1282_v55 }
 0x496   : > { %1131 = vst [vmem:[%s1712_s24 + $0x8] sm:$0xff] %v1119_v13   ;;  %v1114_v56 = vpack.c.bf16 %v905_v32, %v904_v50 }
 0x498   : > { %1115 = vst [vmem:[%s1712_s24] sm:$0xff] %v1114_v56  }
 0x49a   : > { %v1290_v40 = vpop.permute.xlu1 %1289 }
 0x49b   : > { %v1292_v53 = vunpack.i.h.bf16 %v1290_v40  ;;  %v1291_v39 = vunpack.i.l.bf16 %v1290_v40 }
 0x49d   : > { %v909_v54 = vsel %vm279_vm0, %v567_v34, %v1292_v53  ;;  %v908_v36 = vsel %vm279_vm0, %v566_v41, %v1291_v39 }
 0x49e   : > { %v1124_v37 = vpack.c.bf16 %v909_v54, %v908_v36  ;;  %v1295_v51 = vpop.permute.xlu1 %1294 }
 0x49f   : > { %v1297_v44 = vunpack.i.h.bf16 %v1295_v51  ;;  %v1296_v45 = vunpack.i.l.bf16 %v1295_v51 }
 0x4a0   : > { %1132 = vst [vmem:[%s1712_s24 + $0x10] sm:$0xff] %v1124_v37  }
 0x4a1   : > { %v911_v58 = vsel %vm279_vm0, %v569_v43, %v1297_v44  ;;  %v910_v60 = vsel %vm279_vm0, %v568_v42, %v1296_v45 }
 0x4a2   : > { %v1129_v46 = vpack.c.bf16 %v911_v58, %v910_v60 }
 0x4a4   : > { %1133 = vst [vmem:[%s1712_s24 + $0x18] sm:$0xff] %v1129_v46  }
 0x4a5 PF: > { %s12_s11 = sadd.s32 1, %s1399_s11   ;;  %s1742_s9 = smov %s1395_s10 }
 0x4a6   : > { %p9_p5 = scmp.ge.s32.totalorder %s12_s11, 4   ;;  %s1743_s10 = smov %s1745_s12 }
 0x4a8   :  { %11 = sbr.rel (!%p9_p5) target bundleno = 2 (0x2), region = 61 }

// kernel: cross_attention.7
= control target key start
LH: loop header
LB: loop body
LE: loop exit
PB: predicated region body
PF: predicated region fallthrough
CT: control target
= control target key end

     0   :  { %s479_s0 = inlined_call_operand.vmem [shape: bf16[128,128], index: 0, kind: input, shape index: {}]   ;;  %s480_s1 = inlined_call_operand.vmem [shape: bf16[128,128], index: 1, kind: input, shape index: {}]   ;;  %s481_s2 = inlined_call_operand.vmem [shape: f32[1,128], index: 2, kind: input, shape index: {}]   ;;  %s482_s3 = inlined_call_operand.hbm [shape: f32[128,128], index: 3, kind: output, shape index: {}]  }
   0x1   :  { %v364_v0 = vld [vmem:[%s480_s1 + $0x38] sm:$0xff]   ;;  %v365_v1 = vld [vmem:[%s480_s1 + $0x30] sm:$0xff]   ;;  %v366_v2 = vld [vmem:[%s480_s1 + $0x28] sm:$0xff]  }
   0x2   :  { %313 = vmatprep.subr.bf16.mxu0 %v364_v0  ;;  %345 = vmatprep.subr.bf16.mxu1 %v364_v0  ;;  %v367_v3 = vld [vmem:[%s480_s1 + $0x20] sm:$0xff]   ;;  %v368_v6 = vld [vmem:[%s480_s1 + $0x18] sm:$0xff]   ;;  %v369_v7 = vld [vmem:[%s480_s1 + $0x10] sm:$0xff]  }
   0x3   :  { %314 = vmatpush3.bf16.msra.mxu0 %v364_v0  ;;  %353 = vmatpush3.bf16.msra.mxu1 %v364_v0  ;;  %v372_v4 = vld [vmem:[%s479_s0] sm:$0xff]  }
   0x4   :  { %315 = vmatprep.subr.bf16.mxu0 %v365_v1  ;;  %346 = vmatprep.subr.bf16.mxu1 %v365_v1  ;;  %v373_v5 = vld [vmem:[%s479_s0 + $0x20] sm:$0xff]  }
   0x5   :  { %329 = vmatprep.mubr.bf16.mxu0 %v372_v4  ;;  %337 = vmatprep.mubr.bf16.mxu1 %v373_v5 }
   0x7   :  { %316 = vmatpush3.bf16.msra.mxu0 %v365_v1  ;;  %354 = vmatpush3.bf16.msra.mxu1 %v365_v1 }
   0x8   :  { %317 = vmatprep.subr.bf16.mxu0 %v366_v2  ;;  %347 = vmatprep.subr.bf16.mxu1 %v366_v2 }
   0xb   :  { %318 = vmatpush3.bf16.msra.mxu0 %v366_v2  ;;  %355 = vmatpush3.bf16.msra.mxu1 %v366_v2 }
   0xc   :  { %319 = vmatprep.subr.bf16.mxu0 %v367_v3  ;;  %348 = vmatprep.subr.bf16.mxu1 %v367_v3 }
   0xf   :  { %320 = vmatpush3.bf16.msra.mxu0 %v367_v3  ;;  %356 = vmatpush3.bf16.msra.mxu1 %v367_v3 }
  0x10   :  { %321 = vmatprep.subr.bf16.mxu0 %v368_v6  ;;  %349 = vmatprep.subr.bf16.mxu1 %v368_v6 }
  0x11   :  { %8 = vsyncpa [#allocation3], 0  ;;  %v370_v8 = vld [vmem:[%s480_s1 + $0x8] sm:$0xff]   ;;  %v371_v9 = vld [vmem:[%s480_s1] sm:$0xff]  }
  0x12   :  { %v374_v10 = vld [vmem:[%s479_s0 + $0x8] sm:$0xff]   ;;  %v376_v12 = vld [vmem:[%s479_s0 + $0x10] sm:$0xff]   ;;  %v378_v14 = vld [vmem:[%s479_s0 + $0x18] sm:$0xff]  }
  0x13   :  { %322 = vmatpush3.bf16.msra.mxu0 %v368_v6  ;;  %357 = vmatpush3.bf16.msra.mxu1 %v368_v6  ;;  %v375_v11 = vld [vmem:[%s479_s0 + $0x28] sm:$0xff]   ;;  %v377_v13 = vld [vmem:[%s479_s0 + $0x30] sm:$0xff]   ;;  %v379_v15 = vld [vmem:[%s479_s0 + $0x38] sm:$0xff]   ;;  %s402_s0 = smov [#allocation2]  }
  0x14   :  { %323 = vmatprep.subr.bf16.mxu0 %v369_v7  ;;  %350 = vmatprep.subr.bf16.mxu1 %v369_v7  ;;  %v280_v16 = vld [vmem:[%s481_s2] ss:$0 sm:$0xff]  ;;  %s269_s2 = sshll.u32 %s402_s0, 4  ;;  %s270_s2 = int_to_ptr.vmem [resolvable:$true] %s269_s2 }
  0x15   :  { %s380_s18 = scalar_lea.vmem %s270_s2, 2048  ;;  %p385_p1 = scmp.lt.s32.totalorder %s270_s2, %s270_s2 }
  0x16   :  { %p381_p0 = scmp.ne.s32.totalorder %s270_s2, %s380_s18  ;;  %p386_p2 = scmp.lt.s32.totalorder %s380_s18, %s380_s18 }
  0x17   :  { %324 = vmatpush3.bf16.msra.mxu0 %v369_v7  ;;  %358 = vmatpush3.bf16.msra.mxu1 %v369_v7 }
  0x18   :  { %325 = vmatprep.subr.bf16.mxu0 %v370_v8  ;;  %351 = vmatprep.subr.bf16.mxu1 %v370_v8  ;;  %p387_p3 = por %p386_p2, %p385_p1 }
  0x1a   :  { %p388_p4 = pnand %p387_p3, %p381_p0 }
  0x1b   :  { %326 = vmatpush3.bf16.msra.mxu0 %v370_v8  ;;  %359 = vmatpush3.bf16.msra.mxu1 %v370_v8 }
  0x1c   :  { %327 = vmatprep.subr.bf16.mxu0 %v371_v9  ;;  %352 = vmatprep.subr.bf16.mxu1 %v371_v9 }
  0x1f   :  { %328 = vmatpush3.bf16.msra.mxu0 %v371_v9  ;;  %360 = vmatpush3.bf16.msra.mxu1 %v371_v9 }
  0x22   :  { %330 = vmatmul.mubr.bf16.vlgmr.msra.gmra.mxu0 %v374_v10  ;;  %338 = vmatmul.mubr.bf16.vlgmr.msra.gmra.mxu1 %v375_v11 }
  0x23   :  { %333 = vmatprep.mubr.bf16.mxu0 %v376_v12  ;;  %341 = vmatprep.mubr.bf16.mxu1 %v377_v13 }
  0x2a   :  { %334 = vmatmul.mubr.bf16.gmra.mxu0 %v378_v14  ;;  %342 = vmatmul.mubr.bf16.gmra.mxu1 %v379_v15 }
  0xe2   :  { %v331_v17 = vpop.f32.mrf.mxu0  ;;  %v339_v18 = vpop.f32.mrf.mxu1 }
  0xe3   :  { %v194_v19 = vadd.f32 %v331_v17, %v280_v16  ;;  %v226_v20 = vadd.f32 %v339_v18, %v280_v16 }
  0xe4   :  { %v185_v21 = vpop.f32.mrf.mxu0  ;;  %v217_v22 = vpop.f32.mrf.mxu1 }
  0xe5   :  { %250 = vst [vmem:[#allocation2 + $0x10] sm:$0xff] %v194_v19  ;;  %258 = vst [vmem:[#allocation2 + $0x50] sm:$0xff] %v226_v20  ;;  %v186_v23 = vadd.f32 %v280_v16, %v185_v21  ;;  %v218_v24 = vadd.f32 %v280_v16, %v217_v22 }
  0xe6   :  { %v332_v25 = vpop.f32.mrf.mxu0  ;;  %v340_v26 = vpop.f32.mrf.mxu1 }
  0xe7   :  { %248 = vst [vmem:[#allocation2] sm:$0xff] %v186_v23  ;;  %256 = vst [vmem:[#allocation2 + $0x40] sm:$0xff] %v218_v24  ;;  %v197_v27 = vadd.f32 %v332_v25, %v280_v16  ;;  %v229_v28 = vadd.f32 %v340_v26, %v280_v16 }
  0xe8   :  { %v188_v29 = vpop.f32.mrf.mxu0  ;;  %v220_v30 = vpop.f32.mrf.mxu1 }
  0xe9   :  { %251 = vst [vmem:[#allocation2 + $0x18] sm:$0xff] %v197_v27  ;;  %259 = vst [vmem:[#allocation2 + $0x58] sm:$0xff] %v229_v28  ;;  %v189_v31 = vadd.f32 %v280_v16, %v188_v29  ;;  %v221_v32 = vadd.f32 %v280_v16, %v220_v30 }
  0xea   :  { %v335_v33 = vpop.f32.mrf.mxu0  ;;  %v343_v34 = vpop.f32.mrf.mxu1 }
  0xeb   :  { %249 = vst [vmem:[#allocation2 + $0x8] sm:$0xff] %v189_v31  ;;  %257 = vst [vmem:[#allocation2 + $0x48] sm:$0xff] %v221_v32  ;;  %v210_v35 = vadd.f32 %v335_v33, %v280_v16  ;;  %v242_v36 = vadd.f32 %v343_v34, %v280_v16 }
  0xec   :  { %v201_v37 = vpop.f32.mrf.mxu0  ;;  %v233_v38 = vpop.f32.mrf.mxu1 }
  0xed   :  { %254 = vst [vmem:[#allocation2 + $0x30] sm:$0xff] %v210_v35  ;;  %262 = vst [vmem:[#allocation2 + $0x70] sm:$0xff] %v242_v36  ;;  %v202_v39 = vadd.f32 %v280_v16, %v201_v37  ;;  %v234_v40 = vadd.f32 %v280_v16, %v233_v38 }
  0xee   :  { %v336_v41 = vpop.f32.mrf.mxu0  ;;  %v344_v42 = vpop.f32.mrf.mxu1 }
  0xef   :  { %252 = vst [vmem:[#allocation2 + $0x20] sm:$0xff] %v202_v39  ;;  %260 = vst [vmem:[#allocation2 + $0x60] sm:$0xff] %v234_v40  ;;  %v213_v43 = vadd.f32 %v336_v41, %v280_v16  ;;  %v245_v44 = vadd.f32 %v344_v42, %v280_v16 }
  0xf0   :  { %v204_v45 = vpop.f32.mrf.mxu0  ;;  %v236_v46 = vpop.f32.mrf.mxu1 }
  0xf1   :  { %255 = vst [vmem:[#allocation2 + $0x38] sm:$0xff] %v213_v43  ;;  %263 = vst [vmem:[#allocation2 + $0x78] sm:$0xff] %v245_v44  ;;  %v205_v47 = vadd.f32 %v280_v16, %v204_v45  ;;  %v237_v48 = vadd.f32 %v280_v16, %v236_v46 }
  0xf3   :  { %253 = vst [vmem:[#allocation2 + $0x28] sm:$0xff] %v205_v47  ;;  %261 = vst [vmem:[#allocation2 + $0x68] sm:$0xff] %v237_v48 }
  0xf4   :  { %391 = shalt.err (!%p388_p4)
}
  0xf5   :  { %s403_s19 = smov 128   ;;  %s404_s20 = smov 8  }
  0xf6   :  { %275 = dma.vmem_to_hbm [thread:$0]  %s270_s2, 2048, %s482_s3, [#allocation3], %s403_s19, %s403_s19, %s404_s20  }
  0xf7   :  { %400 = dma.done.wait [#allocation3], 2048  }
  0xf8   :  { %401 = vsyncadd [#allocation3], 4294965248 }
  0xf9   :  { %279 = vsyncpa [#allocation3], 1 }

</bundles_post_ra>
